<compile_context>
chip_gen: v7x
topology: tpu7x:2x2x1
jax: 0.10.0
libtpu: 0.0.40
codegen_flags: <defaults>
</compile_context>

<pallas_src>
import jax
import jax.numpy as jnp
from jax.experimental import pallas as pl
from jax.experimental.pallas import tpu as pltpu

N_STACKS = 3      # num_stacks
N_LAYERS = 5      # num_layers
HIDDEN = 32       # hidden_channels
GN_EPS = 1e-5     # GraphNorm eps


# ----------------------------- kernel helpers -----------------------------
def _arma_conv(h_in, a_bf16, iw_f, w_flat, rw_f, b_f, f_out):
    """Fused ARMAConv: the K stacks live side-by-side on the lane axis.

    h_in   : [N, Fin]                 f32
    a_bf16 : [N, N]                   bf16  (gcn-normalized dense adjacency)
    iw_f   : [Fin, K*Fout]            bf16  (init_weight, stacks concatenated)
    w_flat : [(T-1)*K*Fout, K*Fout]   bf16  (per-layer block-diag weight, rows stacked)
    rw_f   : [Fin, T*K*Fout]          bf16  (root_weight, (t, k) concatenated on lanes)
    b_f    : [T, K*Fout]              f32   (bias table)
    """
    K, T = N_STACKS, N_LAYERS
    KF = K * f_out
    h_bf = h_in.astype(jnp.bfloat16)

    # All T*K loop-invariant root terms in ONE matmul.
    roots = jnp.dot(h_bf, rw_f, preferred_element_type=jnp.float32)      # [N, T*KF]

    out = None
    for t in range(T):
        if t == 0:
            out = jnp.dot(h_bf, iw_f, preferred_element_type=jnp.float32)
        else:
            out = jnp.dot(out.astype(jnp.bfloat16),
                          w_flat[(t - 1) * KF:t * KF, :],
                          preferred_element_type=jnp.float32)
        # propagate: one A @ H for all K stacks at once
        out = jnp.dot(a_bf16, out.astype(jnp.bfloat16),
                      preferred_element_type=jnp.float32)
        out = out + roots[:, t * KF:(t + 1) * KF] + b_f[t:t + 1, :]
        out = jnp.maximum(out, 0.0)                                       # act = ReLU
    # mean over the K stacks (lane blocks)
    acc = out[:, 0:f_out]
    for k in range(1, K):
        acc = acc + out[:, k * f_out:(k + 1) * f_out]
    return acc * (1.0 / K)


def _graph_norm(h):
    # GraphNorm with default init (weight=1, bias=0, mean_scale=1), single graph.
    mean = jnp.mean(h, axis=0, keepdims=True)
    out = h - mean
    var = jnp.mean(out * out, axis=0, keepdims=True)
    return out * jax.lax.rsqrt(var + GN_EPS)


def _col_to_row(col):
    """[N, 1] column -> [1, N] lane-dense row without a 1-lane XLU transpose:
    diagonal select on an iota mask, then sublane reduce."""
    n = col.shape[0]
    rows = jax.lax.broadcasted_iota(jnp.int32, (n, n), 0)
    cols = jax.lax.broadcasted_iota(jnp.int32, (n, n), 1)
    return jnp.sum(
        jnp.where(rows == cols, jnp.broadcast_to(col, (n, n)), 0.0),
        axis=0, keepdims=True)                                            # [1, N]


# --------------------------------- kernel ---------------------------------
def gnn_arma_kernel(x_ref, a_ref,
                    iw1_ref, w1_ref, rw1_ref, b1_ref,
                    iw2_ref, w2_ref, rw2_ref, b2_ref,
                    iw3_ref, w3_ref, rw3_ref, b3_ref,
                    clsw_ref, clsb_ref,
                    nodes_ref, graph_ref):
    x = x_ref[...]                 # [N, Fin]  f32
    a = a_ref[...]                 # [N, N]    bf16

    # ARMAconv1 -> gn1 -> relu -> dropout1 (identity in eval)
    h = _arma_conv(x, a, iw1_ref[...], w1_ref[...], rw1_ref[...], b1_ref[...], HIDDEN)
    h = jnp.maximum(_graph_norm(h), 0.0)

    # ARMAconv2 -> gn2 -> relu -> dropout2 (identity; attr missing in reference)
    h = _arma_conv(h, a, iw2_ref[...], w2_ref[...], rw2_ref[...], b2_ref[...], HIDDEN)
    h = jnp.maximum(_graph_norm(h), 0.0)

    # ARMAconv3 -> 1-channel tail, all lane-dense on [1, N]
    h = _arma_conv(h, a, iw3_ref[...], w3_ref[...], rw3_ref[...], b3_ref[...], 1)
    h_row = _col_to_row(h)                                   # [1, N]

    # TODO(synk): reference gn3 is GraphNorm(hidden_channels) on a 1-channel
    # tensor (shape mismatch / broadcast bug in PyTorch); normalized over the
    # actual single channel here (lane-axis mean/var over nodes).
    mean = jnp.mean(h_row, axis=1, keepdims=True)
    d = h_row - mean
    var = jnp.mean(d * d, axis=1, keepdims=True)
    h_row = d * jax.lax.rsqrt(var + GN_EPS)
    h_row = jnp.maximum(h_row, 0.0)                          # relu; dropout3 = identity

    # classifier Linear(1, 1) as a scalar FMA on the VPU (no 1-lane MXU matmul)
    logits_row = h_row * clsw_ref[0, 0] + clsb_ref[0, 0]     # [1, N]

    nodes_ref[...] = logits_row
    graph_ref[...] = jnp.max(logits_row, axis=1, keepdims=True)   # [1, 1] global max


# ------------------------ wrapper-side weight fusion ------------------------
def _block_diag(mats):
    """[K x (F,F)] -> [K*F, K*F] block diagonal."""
    k = len(mats)
    rows = []
    for i, m in enumerate(mats):
        row = [m if j == i else jnp.zeros_like(m) for j in range(k)]
        rows.append(jnp.concatenate(row, axis=1))
    return jnp.concatenate(rows, axis=0)


def _fuse_arma(iw, w, rw, b):
    """PyG ARMAConv params -> lane-dense 2-D fused tables (bf16 matmul inputs)."""
    K = iw.shape[0]
    T = rw.shape[0]
    iw_f = jnp.concatenate([iw[k] for k in range(K)], axis=1)                  # [Fin, K*Fout]
    w_flat = jnp.concatenate([_block_diag([w[t, k] for k in range(K)])
                              for t in range(T - 1)], axis=0)                  # [(T-1)KF, KF]
    rw_f = jnp.concatenate([rw[t, k] for t in range(T) for k in range(K)],
                           axis=1)                                             # [Fin, T*K*Fout]
    b_f = jnp.concatenate([jnp.concatenate([b[t, k] for k in range(K)], axis=1)
                           for t in range(T)], axis=0)                         # [T, K*Fout]
    return (iw_f.astype(jnp.bfloat16), w_flat.astype(jnp.bfloat16),
            rw_f.astype(jnp.bfloat16), b_f.astype(jnp.float32))


# --------------------------------- wrapper ---------------------------------
@jax.jit
def gnn_arma_forward(x, a_norm, params):
    n = x.shape[0]

    f1 = _fuse_arma(params["iw1"], params["w1"], params["rw1"], params["b1"])
    f2 = _fuse_arma(params["iw2"], params["w2"], params["rw2"], params["b2"])
    f3 = _fuse_arma(params["iw3"], params["w3"], params["rw3"], params["b3"])

    ins = (x.astype(jnp.float32), a_norm.astype(jnp.bfloat16),
           *f1, *f2, *f3,
           params["cls_w"].astype(jnp.float32), params["cls_b"].astype(jnp.float32))

    vmem = pl.BlockSpec(memory_space=pltpu.MemorySpace.VMEM)
    smem = pl.BlockSpec(memory_space=pltpu.MemorySpace.SMEM)

    # No grid: single invocation, everything VMEM-resident (tiny at N=16).
    # TODO(synk): for large N the dense A_norm must be tiled over a (row, col)
    # grid with an f32 accumulator and vmem_limit_bytes raised (v7x VMEM is
    # 64 MiB); not needed at this size.
    nodes, graph = pl.pallas_call(
        gnn_arma_kernel,
        in_specs=[vmem] * 14 + [smem, smem],
        out_specs=(vmem, vmem),
        out_shape=(jax.ShapeDtypeStruct((1, n), jnp.float32),
                   jax.ShapeDtypeStruct((1, 1), jnp.float32)),
    )(*ins)
    return nodes[0], graph[0, 0]


def gcn_norm_dense(edge_index, edge_weight, num_nodes):
    """gcn_norm(add_self_loops=False) materialized as a dense [N, N] matrix
    such that propagate(edge_index, x) == A_norm @ x."""
    row, col = edge_index[0], edge_index[1]
    deg = jnp.zeros((num_nodes,), jnp.float32).at[col].add(edge_weight)
    dinv = jnp.where(deg > 0, jax.lax.rsqrt(deg), 0.0)
    norm = dinv[row] * edge_weight * dinv[col]
    return jnp.zeros((num_nodes, num_nodes), jnp.float32).at[col, row].add(norm)


def init_params(key, in_channels, hidden_channels):
    """Deterministic parameter init (glorot weights, zero biases), PyG shapes."""
    K, T = N_STACKS, N_LAYERS

    def glorot(k, shape):
        fan_in, fan_out = shape[-2], shape[-1]
        lim = (6.0 / (fan_in + fan_out)) ** 0.5
        return jax.random.uniform(k, shape, jnp.float32, -lim, lim)

    ks = jax.random.split(key, 12)

    def arma_params(k0, k1, k2, f_in, f_out):
        return dict(
            iw=glorot(k0, (K, f_in, f_out)),
            w=glorot(k1, (T - 1, K, f_out, f_out)),
            rw=glorot(k2, (T, K, f_in, f_out)),
            b=jnp.zeros((T, K, 1, f_out), jnp.float32),
        )

    p1 = arma_params(ks[0], ks[1], ks[2], in_channels, hidden_channels)
    p2 = arma_params(ks[3], ks[4], ks[5], hidden_channels, hidden_channels)
    p3 = arma_params(ks[6], ks[7], ks[8], hidden_channels, 1)

    return {
        "iw1": p1["iw"], "w1": p1["w"], "rw1": p1["rw"], "b1": p1["b"],
        "iw2": p2["iw"], "w2": p2["w"], "rw2": p2["rw"], "b2": p2["b"],
        "iw3": p3["iw"], "w3": p3["w"], "rw3": p3["rw"], "b3": p3["b"],
        "cls_w": jax.random.uniform(ks[9], (1, 1), jnp.float32, -1.0, 1.0),
        "cls_b": jax.random.uniform(ks[10], (1, 1), jnp.float32, -1.0, 1.0),
    }


if __name__ == "__main__":
    N, E = 16, 48                 # nodes, edges
    IN_CH = 2

    key = jax.random.PRNGKey(0)
    k_x, k_src, k_dst, k_w, k_p = jax.random.split(key, 5)

    # node features
    x = jax.random.normal(k_x, (N, IN_CH), jnp.float32)

    # edges: a ring (guarantees every node has degree) + random edges
    ring_src = jnp.arange(N, dtype=jnp.int32)
    ring_dst = (ring_src + 1) % N
    rnd_src = jax.random.randint(k_src, (E - N,), 0, N, dtype=jnp.int32)
    rnd_dst = jax.random.randint(k_dst, (E - N,), 0, N, dtype=jnp.int32)
    edge_index = jnp.stack([jnp.concatenate([ring_src, rnd_src]),
                            jnp.concatenate([ring_dst, rnd_dst])], axis=0)
    weights = jax.random.uniform(k_w, (E,), jnp.float32, 0.5, 1.5)

    params = init_params(k_p, IN_CH, HIDDEN)
    a_norm = gcn_norm_dense(edge_index, weights, N)

    logits_nodes, logits_graph = gnn_arma_forward(x, a_norm, params)
    jax.block_until_ready((logits_nodes, logits_graph))

    assert logits_nodes.shape == (N,)
    assert logits_graph.shape == ()
    assert bool(jnp.all(jnp.isfinite(logits_nodes)))
    assert bool(jnp.isfinite(logits_graph))
    print("KERNEL_OK")
</pallas_src>

<mosaic_0001>
module attributes {stable_mosaic.version = 11 : i64} {
  func.func @gnn_arma_kernel(%arg0: memref<16x2xf32, #tpu.memory_space<vmem>>, %arg1: memref<16x16xbf16, #tpu.memory_space<vmem>>, %arg2: memref<2x96xbf16, #tpu.memory_space<vmem>>, %arg3: memref<384x96xbf16, #tpu.memory_space<vmem>>, %arg4: memref<2x480xbf16, #tpu.memory_space<vmem>>, %arg5: memref<5x96xf32, #tpu.memory_space<vmem>>, %arg6: memref<32x96xbf16, #tpu.memory_space<vmem>>, %arg7: memref<384x96xbf16, #tpu.memory_space<vmem>>, %arg8: memref<32x480xbf16, #tpu.memory_space<vmem>>, %arg9: memref<5x96xf32, #tpu.memory_space<vmem>>, %arg10: memref<32x3xbf16, #tpu.memory_space<vmem>>, %arg11: memref<12x3xbf16, #tpu.memory_space<vmem>>, %arg12: memref<32x15xbf16, #tpu.memory_space<vmem>>, %arg13: memref<5x3xf32, #tpu.memory_space<vmem>>, %arg14: memref<1x1xf32, #tpu.memory_space<smem>>, %arg15: memref<1x1xf32, #tpu.memory_space<smem>>, %arg16: memref<1x16xf32, #tpu.memory_space<vmem>>, %arg17: memref<1x1xf32, #tpu.memory_space<vmem>>) attributes {dimension_semantics = [], scalar_prefetch = 0 : i64, scratch_operands = 0 : i64, tpu.core_type = #tpu.core_type<tc>} {
    %c0 = arith.constant 0 : index
    %c0_0 = arith.constant 0 : index
    %0 = vector.load %arg0[%c0, %c0_0] : memref<16x2xf32, #tpu.memory_space<vmem>>, vector<16x2xf32>
    %c0_1 = arith.constant 0 : index
    %c0_2 = arith.constant 0 : index
    %1 = vector.load %arg1[%c0_1, %c0_2] : memref<16x16xbf16, #tpu.memory_space<vmem>>, vector<16x16xbf16>
    %c0_3 = arith.constant 0 : index
    %c0_4 = arith.constant 0 : index
    %2 = vector.load %arg2[%c0_3, %c0_4] : memref<2x96xbf16, #tpu.memory_space<vmem>>, vector<2x96xbf16>
    %c0_5 = arith.constant 0 : index
    %c0_6 = arith.constant 0 : index
    %3 = vector.load %arg3[%c0_5, %c0_6] : memref<384x96xbf16, #tpu.memory_space<vmem>>, vector<384x96xbf16>
    %c0_7 = arith.constant 0 : index
    %c0_8 = arith.constant 0 : index
    %4 = vector.load %arg4[%c0_7, %c0_8] : memref<2x480xbf16, #tpu.memory_space<vmem>>, vector<2x480xbf16>
    %c0_9 = arith.constant 0 : index
    %c0_10 = arith.constant 0 : index
    %5 = vector.load %arg5[%c0_9, %c0_10] : memref<5x96xf32, #tpu.memory_space<vmem>>, vector<5x96xf32>
    %6 = arith.truncf %0 : vector<16x2xf32> to vector<16x2xbf16>
    %cst = arith.constant dense<0.000000e+00> : vector<16x480xf32>
    %7 = tpu.matmul %6, %4, %cst {dimension_numbers = #tpu.dot_dimension_numbers<[1], [0], [0], [1], [0, 0, 1, 1], [], []>} : vector<16x2xbf16>, vector<2x480xbf16>, vector<16x480xf32> -> vector<16x480xf32>
    %cst_11 = arith.constant dense<0.000000e+00> : vector<16x96xf32>
    %8 = tpu.matmul %6, %2, %cst_11 {dimension_numbers = #tpu.dot_dimension_numbers<[1], [0], [0], [1], [0, 0, 1, 1], [], []>} : vector<16x2xbf16>, vector<2x96xbf16>, vector<16x96xf32> -> vector<16x96xf32>
    %9 = arith.truncf %8 : vector<16x96xf32> to vector<16x96xbf16>
    %cst_12 = arith.constant dense<0.000000e+00> : vector<16x96xf32>
    %10 = tpu.matmul %1, %9, %cst_12 {dimension_numbers = #tpu.dot_dimension_numbers<[1], [0], [0], [1], [0, 0, 1, 1], [], []>} : vector<16x16xbf16>, vector<16x96xbf16>, vector<16x96xf32> -> vector<16x96xf32>
    %11 = vector.extract_strided_slice %7 {offsets = [0, 0], sizes = [16, 96], strides = [1, 1]} : vector<16x480xf32> to vector<16x96xf32>
    %12 = arith.addf %10, %11 : vector<16x96xf32>
    %13 = vector.extract_strided_slice %5 {offsets = [0, 0], sizes = [1, 96], strides = [1, 1]} : vector<5x96xf32> to vector<1x96xf32>
    %14 = vector.broadcast %13 : vector<1x96xf32> to vector<16x96xf32>
    %15 = arith.addf %12, %14 : vector<16x96xf32>
    %cst_13 = arith.constant 0.000000e+00 : f32
    %16 = vector.broadcast %cst_13 : f32 to vector<16x96xf32>
    %17 = arith.maximumf %15, %16 : vector<16x96xf32>
    %18 = arith.truncf %17 : vector<16x96xf32> to vector<16x96xbf16>
    %19 = vector.extract_strided_slice %3 {offsets = [0, 0], sizes = [96, 96], strides = [1, 1]} : vector<384x96xbf16> to vector<96x96xbf16>
    %cst_14 = arith.constant dense<0.000000e+00> : vector<16x96xf32>
    %20 = tpu.matmul %18, %19, %cst_14 {dimension_numbers = #tpu.dot_dimension_numbers<[1], [0], [0], [1], [0, 0, 1, 1], [], []>} : vector<16x96xbf16>, vector<96x96xbf16>, vector<16x96xf32> -> vector<16x96xf32>
    %21 = arith.truncf %20 : vector<16x96xf32> to vector<16x96xbf16>
    %cst_15 = arith.constant dense<0.000000e+00> : vector<16x96xf32>
    %22 = tpu.matmul %1, %21, %cst_15 {dimension_numbers = #tpu.dot_dimension_numbers<[1], [0], [0], [1], [0, 0, 1, 1], [], []>} : vector<16x16xbf16>, vector<16x96xbf16>, vector<16x96xf32> -> vector<16x96xf32>
    %23 = vector.extract_strided_slice %7 {offsets = [0, 96], sizes = [16, 96], strides = [1, 1]} : vector<16x480xf32> to vector<16x96xf32>
    %24 = arith.addf %22, %23 : vector<16x96xf32>
    %25 = vector.extract_strided_slice %5 {offsets = [1, 0], sizes = [1, 96], strides = [1, 1]} : vector<5x96xf32> to vector<1x96xf32>
    %26 = vector.broadcast %25 : vector<1x96xf32> to vector<16x96xf32>
    %27 = arith.addf %24, %26 : vector<16x96xf32>
    %cst_16 = arith.constant 0.000000e+00 : f32
    %28 = vector.broadcast %cst_16 : f32 to vector<16x96xf32>
    %29 = arith.maximumf %27, %28 : vector<16x96xf32>
    %30 = arith.truncf %29 : vector<16x96xf32> to vector<16x96xbf16>
    %31 = vector.extract_strided_slice %3 {offsets = [96, 0], sizes = [96, 96], strides = [1, 1]} : vector<384x96xbf16> to vector<96x96xbf16>
    %cst_17 = arith.constant dense<0.000000e+00> : vector<16x96xf32>
    %32 = tpu.matmul %30, %31, %cst_17 {dimension_numbers = #tpu.dot_dimension_numbers<[1], [0], [0], [1], [0, 0, 1, 1], [], []>} : vector<16x96xbf16>, vector<96x96xbf16>, vector<16x96xf32> -> vector<16x96xf32>
    %33 = arith.truncf %32 : vector<16x96xf32> to vector<16x96xbf16>
    %cst_18 = arith.constant dense<0.000000e+00> : vector<16x96xf32>
    %34 = tpu.matmul %1, %33, %cst_18 {dimension_numbers = #tpu.dot_dimension_numbers<[1], [0], [0], [1], [0, 0, 1, 1], [], []>} : vector<16x16xbf16>, vector<16x96xbf16>, vector<16x96xf32> -> vector<16x96xf32>
    %35 = vector.extract_strided_slice %7 {offsets = [0, 192], sizes = [16, 96], strides = [1, 1]} : vector<16x480xf32> to vector<16x96xf32>
    %36 = arith.addf %34, %35 : vector<16x96xf32>
    %37 = vector.extract_strided_slice %5 {offsets = [2, 0], sizes = [1, 96], strides = [1, 1]} : vector<5x96xf32> to vector<1x96xf32>
    %38 = vector.broadcast %37 : vector<1x96xf32> to vector<16x96xf32>
    %39 = arith.addf %36, %38 : vector<16x96xf32>
    %cst_19 = arith.constant 0.000000e+00 : f32
    %40 = vector.broadcast %cst_19 : f32 to vector<16x96xf32>
    %41 = arith.maximumf %39, %40 : vector<16x96xf32>
    %42 = arith.truncf %41 : vector<16x96xf32> to vector<16x96xbf16>
    %43 = vector.extract_strided_slice %3 {offsets = [192, 0], sizes = [96, 96], strides = [1, 1]} : vector<384x96xbf16> to vector<96x96xbf16>
    %cst_20 = arith.constant dense<0.000000e+00> : vector<16x96xf32>
    %44 = tpu.matmul %42, %43, %cst_20 {dimension_numbers = #tpu.dot_dimension_numbers<[1], [0], [0], [1], [0, 0, 1, 1], [], []>} : vector<16x96xbf16>, vector<96x96xbf16>, vector<16x96xf32> -> vector<16x96xf32>
    %45 = arith.truncf %44 : vector<16x96xf32> to vector<16x96xbf16>
    %cst_21 = arith.constant dense<0.000000e+00> : vector<16x96xf32>
    %46 = tpu.matmul %1, %45, %cst_21 {dimension_numbers = #tpu.dot_dimension_numbers<[1], [0], [0], [1], [0, 0, 1, 1], [], []>} : vector<16x16xbf16>, vector<16x96xbf16>, vector<16x96xf32> -> vector<16x96xf32>
    %47 = vector.extract_strided_slice %7 {offsets = [0, 288], sizes = [16, 96], strides = [1, 1]} : vector<16x480xf32> to vector<16x96xf32>
    %48 = arith.addf %46, %47 : vector<16x96xf32>
    %49 = vector.extract_strided_slice %5 {offsets = [3, 0], sizes = [1, 96], strides = [1, 1]} : vector<5x96xf32> to vector<1x96xf32>
    %50 = vector.broadcast %49 : vector<1x96xf32> to vector<16x96xf32>
    %51 = arith.addf %48, %50 : vector<16x96xf32>
    %cst_22 = arith.constant 0.000000e+00 : f32
    %52 = vector.broadcast %cst_22 : f32 to vector<16x96xf32>
    %53 = arith.maximumf %51, %52 : vector<16x96xf32>
    %54 = arith.truncf %53 : vector<16x96xf32> to vector<16x96xbf16>
    %55 = vector.extract_strided_slice %3 {offsets = [288, 0], sizes = [96, 96], strides = [1, 1]} : vector<384x96xbf16> to vector<96x96xbf16>
    %cst_23 = arith.constant dense<0.000000e+00> : vector<16x96xf32>
    %56 = tpu.matmul %54, %55, %cst_23 {dimension_numbers = #tpu.dot_dimension_numbers<[1], [0], [0], [1], [0, 0, 1, 1], [], []>} : vector<16x96xbf16>, vector<96x96xbf16>, vector<16x96xf32> -> vector<16x96xf32>
    %57 = arith.truncf %56 : vector<16x96xf32> to vector<16x96xbf16>
    %cst_24 = arith.constant dense<0.000000e+00> : vector<16x96xf32>
    %58 = tpu.matmul %1, %57, %cst_24 {dimension_numbers = #tpu.dot_dimension_numbers<[1], [0], [0], [1], [0, 0, 1, 1], [], []>} : vector<16x16xbf16>, vector<16x96xbf16>, vector<16x96xf32> -> vector<16x96xf32>
    %59 = vector.extract_strided_slice %7 {offsets = [0, 384], sizes = [16, 96], strides = [1, 1]} : vector<16x480xf32> to vector<16x96xf32>
    %60 = arith.addf %58, %59 : vector<16x96xf32>
    %61 = vector.extract_strided_slice %5 {offsets = [4, 0], sizes = [1, 96], strides = [1, 1]} : vector<5x96xf32> to vector<1x96xf32>
    %62 = vector.broadcast %61 : vector<1x96xf32> to vector<16x96xf32>
    %63 = arith.addf %60, %62 : vector<16x96xf32>
    %cst_25 = arith.constant 0.000000e+00 : f32
    %64 = vector.broadcast %cst_25 : f32 to vector<16x96xf32>
    %65 = arith.maximumf %63, %64 : vector<16x96xf32>
    %66 = vector.extract_strided_slice %65 {offsets = [0, 0], sizes = [16, 32], strides = [1, 1]} : vector<16x96xf32> to vector<16x32xf32>
    %67 = vector.extract_strided_slice %65 {offsets = [0, 32], sizes = [16, 32], strides = [1, 1]} : vector<16x96xf32> to vector<16x32xf32>
    %68 = arith.addf %66, %67 : vector<16x32xf32>
    %69 = vector.extract_strided_slice %65 {offsets = [0, 64], sizes = [16, 32], strides = [1, 1]} : vector<16x96xf32> to vector<16x32xf32>
    %70 = arith.addf %68, %69 : vector<16x32xf32>
    %cst_26 = arith.constant 0.333333343 : f32
    %71 = vector.broadcast %cst_26 : f32 to vector<16x32xf32>
    %72 = arith.mulf %70, %71 : vector<16x32xf32>
    %cst_27 = arith.constant dense<0.000000e+00> : vector<32xf32>
    %73 = vector.multi_reduction <add>, %72, %cst_27 [0] : vector<16x32xf32> to vector<32xf32>
    %74 = vector.shape_cast %73 : vector<32xf32> to vector<1x32xf32>
    %cst_28 = arith.constant 1.600000e+01 : f32
    %75 = vector.broadcast %cst_28 : f32 to vector<1x32xf32>
    %76 = arith.divf %74, %75 : vector<1x32xf32>
    %77 = vector.broadcast %76 : vector<1x32xf32> to vector<16x32xf32>
    %78 = arith.subf %72, %77 : vector<16x32xf32>
    %79 = arith.mulf %78, %78 : vector<16x32xf32>
    %cst_29 = arith.constant dense<0.000000e+00> : vector<32xf32>
    %80 = vector.multi_reduction <add>, %79, %cst_29 [0] : vector<16x32xf32> to vector<32xf32>
    %81 = vector.shape_cast %80 : vector<32xf32> to vector<1x32xf32>
    %cst_30 = arith.constant 1.600000e+01 : f32
    %82 = vector.broadcast %cst_30 : f32 to vector<1x32xf32>
    %83 = arith.divf %81, %82 : vector<1x32xf32>
    %cst_31 = arith.constant 9.99999974E-6 : f32
    %84 = vector.broadcast %cst_31 : f32 to vector<1x32xf32>
    %85 = arith.addf %83, %84 : vector<1x32xf32>
    %86 = math.rsqrt %85 : vector<1x32xf32>
    %87 = vector.broadcast %86 : vector<1x32xf32> to vector<16x32xf32>
    %88 = arith.mulf %78, %87 : vector<16x32xf32>
    %cst_32 = arith.constant 0.000000e+00 : f32
    %89 = vector.broadcast %cst_32 : f32 to vector<16x32xf32>
    %90 = arith.maximumf %88, %89 : vector<16x32xf32>
    %c0_33 = arith.constant 0 : index
    %c0_34 = arith.constant 0 : index
    %91 = vector.load %arg6[%c0_33, %c0_34] : memref<32x96xbf16, #tpu.memory_space<vmem>>, vector<32x96xbf16>
    %c0_35 = arith.constant 0 : index
    %c0_36 = arith.constant 0 : index
    %92 = vector.load %arg7[%c0_35, %c0_36] : memref<384x96xbf16, #tpu.memory_space<vmem>>, vector<384x96xbf16>
    %c0_37 = arith.constant 0 : index
    %c0_38 = arith.constant 0 : index
    %93 = vector.load %arg8[%c0_37, %c0_38] : memref<32x480xbf16, #tpu.memory_space<vmem>>, vector<32x480xbf16>
    %c0_39 = arith.constant 0 : index
    %c0_40 = arith.constant 0 : index
    %94 = vector.load %arg9[%c0_39, %c0_40] : memref<5x96xf32, #tpu.memory_space<vmem>>, vector<5x96xf32>
    %95 = arith.truncf %90 : vector<16x32xf32> to vector<16x32xbf16>
    %cst_41 = arith.constant dense<0.000000e+00> : vector<16x480xf32>
    %96 = tpu.matmul %95, %93, %cst_41 {dimension_numbers = #tpu.dot_dimension_numbers<[1], [0], [0], [1], [0, 0, 1, 1], [], []>} : vector<16x32xbf16>, vector<32x480xbf16>, vector<16x480xf32> -> vector<16x480xf32>
    %cst_42 = arith.constant dense<0.000000e+00> : vector<16x96xf32>
    %97 = tpu.matmul %95, %91, %cst_42 {dimension_numbers = #tpu.dot_dimension_numbers<[1], [0], [0], [1], [0, 0, 1, 1], [], []>} : vector<16x32xbf16>, vector<32x96xbf16>, vector<16x96xf32> -> vector<16x96xf32>
    %98 = arith.truncf %97 : vector<16x96xf32> to vector<16x96xbf16>
    %cst_43 = arith.constant dense<0.000000e+00> : vector<16x96xf32>
    %99 = tpu.matmul %1, %98, %cst_43 {dimension_numbers = #tpu.dot_dimension_numbers<[1], [0], [0], [1], [0, 0, 1, 1], [], []>} : vector<16x16xbf16>, vector<16x96xbf16>, vector<16x96xf32> -> vector<16x96xf32>
    %100 = vector.extract_strided_slice %96 {offsets = [0, 0], sizes = [16, 96], strides = [1, 1]} : vector<16x480xf32> to vector<16x96xf32>
    %101 = arith.addf %99, %100 : vector<16x96xf32>
    %102 = vector.extract_strided_slice %94 {offsets = [0, 0], sizes = [1, 96], strides = [1, 1]} : vector<5x96xf32> to vector<1x96xf32>
    %103 = vector.broadcast %102 : vector<1x96xf32> to vector<16x96xf32>
    %104 = arith.addf %101, %103 : vector<16x96xf32>
    %cst_44 = arith.constant 0.000000e+00 : f32
    %105 = vector.broadcast %cst_44 : f32 to vector<16x96xf32>
    %106 = arith.maximumf %104, %105 : vector<16x96xf32>
    %107 = arith.truncf %106 : vector<16x96xf32> to vector<16x96xbf16>
    %108 = vector.extract_strided_slice %92 {offsets = [0, 0], sizes = [96, 96], strides = [1, 1]} : vector<384x96xbf16> to vector<96x96xbf16>
    %cst_45 = arith.constant dense<0.000000e+00> : vector<16x96xf32>
    %109 = tpu.matmul %107, %108, %cst_45 {dimension_numbers = #tpu.dot_dimension_numbers<[1], [0], [0], [1], [0, 0, 1, 1], [], []>} : vector<16x96xbf16>, vector<96x96xbf16>, vector<16x96xf32> -> vector<16x96xf32>
    %110 = arith.truncf %109 : vector<16x96xf32> to vector<16x96xbf16>
    %cst_46 = arith.constant dense<0.000000e+00> : vector<16x96xf32>
    %111 = tpu.matmul %1, %110, %cst_46 {dimension_numbers = #tpu.dot_dimension_numbers<[1], [0], [0], [1], [0, 0, 1, 1], [], []>} : vector<16x16xbf16>, vector<16x96xbf16>, vector<16x96xf32> -> vector<16x96xf32>
    %112 = vector.extract_strided_slice %96 {offsets = [0, 96], sizes = [16, 96], strides = [1, 1]} : vector<16x480xf32> to vector<16x96xf32>
    %113 = arith.addf %111, %112 : vector<16x96xf32>
    %114 = vector.extract_strided_slice %94 {offsets = [1, 0], sizes = [1, 96], strides = [1, 1]} : vector<5x96xf32> to vector<1x96xf32>
    %115 = vector.broadcast %114 : vector<1x96xf32> to vector<16x96xf32>
    %116 = arith.addf %113, %115 : vector<16x96xf32>
    %cst_47 = arith.constant 0.000000e+00 : f32
    %117 = vector.broadcast %cst_47 : f32 to vector<16x96xf32>
    %118 = arith.maximumf %116, %117 : vector<16x96xf32>
    %119 = arith.truncf %118 : vector<16x96xf32> to vector<16x96xbf16>
    %120 = vector.extract_strided_slice %92 {offsets = [96, 0], sizes = [96, 96], strides = [1, 1]} : vector<384x96xbf16> to vector<96x96xbf16>
    %cst_48 = arith.constant dense<0.000000e+00> : vector<16x96xf32>
    %121 = tpu.matmul %119, %120, %cst_48 {dimension_numbers = #tpu.dot_dimension_numbers<[1], [0], [0], [1], [0, 0, 1, 1], [], []>} : vector<16x96xbf16>, vector<96x96xbf16>, vector<16x96xf32> -> vector<16x96xf32>
    %122 = arith.truncf %121 : vector<16x96xf32> to vector<16x96xbf16>
    %cst_49 = arith.constant dense<0.000000e+00> : vector<16x96xf32>
    %123 = tpu.matmul %1, %122, %cst_49 {dimension_numbers = #tpu.dot_dimension_numbers<[1], [0], [0], [1], [0, 0, 1, 1], [], []>} : vector<16x16xbf16>, vector<16x96xbf16>, vector<16x96xf32> -> vector<16x96xf32>
    %124 = vector.extract_strided_slice %96 {offsets = [0, 192], sizes = [16, 96], strides = [1, 1]} : vector<16x480xf32> to vector<16x96xf32>
    %125 = arith.addf %123, %124 : vector<16x96xf32>
    %126 = vector.extract_strided_slice %94 {offsets = [2, 0], sizes = [1, 96], strides = [1, 1]} : vector<5x96xf32> to vector<1x96xf32>
    %127 = vector.broadcast %126 : vector<1x96xf32> to vector<16x96xf32>
    %128 = arith.addf %125, %127 : vector<16x96xf32>
    %cst_50 = arith.constant 0.000000e+00 : f32
    %129 = vector.broadcast %cst_50 : f32 to vector<16x96xf32>
    %130 = arith.maximumf %128, %129 : vector<16x96xf32>
    %131 = arith.truncf %130 : vector<16x96xf32> to vector<16x96xbf16>
    %132 = vector.extract_strided_slice %92 {offsets = [192, 0], sizes = [96, 96], strides = [1, 1]} : vector<384x96xbf16> to vector<96x96xbf16>
    %cst_51 = arith.constant dense<0.000000e+00> : vector<16x96xf32>
    %133 = tpu.matmul %131, %132, %cst_51 {dimension_numbers = #tpu.dot_dimension_numbers<[1], [0], [0], [1], [0, 0, 1, 1], [], []>} : vector<16x96xbf16>, vector<96x96xbf16>, vector<16x96xf32> -> vector<16x96xf32>
    %134 = arith.truncf %133 : vector<16x96xf32> to vector<16x96xbf16>
    %cst_52 = arith.constant dense<0.000000e+00> : vector<16x96xf32>
    %135 = tpu.matmul %1, %134, %cst_52 {dimension_numbers = #tpu.dot_dimension_numbers<[1], [0], [0], [1], [0, 0, 1, 1], [], []>} : vector<16x16xbf16>, vector<16x96xbf16>, vector<16x96xf32> -> vector<16x96xf32>
    %136 = vector.extract_strided_slice %96 {offsets = [0, 288], sizes = [16, 96], strides = [1, 1]} : vector<16x480xf32> to vector<16x96xf32>
    %137 = arith.addf %135, %136 : vector<16x96xf32>
    %138 = vector.extract_strided_slice %94 {offsets = [3, 0], sizes = [1, 96], strides = [1, 1]} : vector<5x96xf32> to vector<1x96xf32>
    %139 = vector.broadcast %138 : vector<1x96xf32> to vector<16x96xf32>
    %140 = arith.addf %137, %139 : vector<16x96xf32>
    %cst_53 = arith.constant 0.000000e+00 : f32
    %141 = vector.broadcast %cst_53 : f32 to vector<16x96xf32>
    %142 = arith.maximumf %140, %141 : vector<16x96xf32>
    %143 = arith.truncf %142 : vector<16x96xf32> to vector<16x96xbf16>
    %144 = vector.extract_strided_slice %92 {offsets = [288, 0], sizes = [96, 96], strides = [1, 1]} : vector<384x96xbf16> to vector<96x96xbf16>
    %cst_54 = arith.constant dense<0.000000e+00> : vector<16x96xf32>
    %145 = tpu.matmul %143, %144, %cst_54 {dimension_numbers = #tpu.dot_dimension_numbers<[1], [0], [0], [1], [0, 0, 1, 1], [], []>} : vector<16x96xbf16>, vector<96x96xbf16>, vector<16x96xf32> -> vector<16x96xf32>
    %146 = arith.truncf %145 : vector<16x96xf32> to vector<16x96xbf16>
    %cst_55 = arith.constant dense<0.000000e+00> : vector<16x96xf32>
    %147 = tpu.matmul %1, %146, %cst_55 {dimension_numbers = #tpu.dot_dimension_numbers<[1], [0], [0], [1], [0, 0, 1, 1], [], []>} : vector<16x16xbf16>, vector<16x96xbf16>, vector<16x96xf32> -> vector<16x96xf32>
    %148 = vector.extract_strided_slice %96 {offsets = [0, 384], sizes = [16, 96], strides = [1, 1]} : vector<16x480xf32> to vector<16x96xf32>
    %149 = arith.addf %147, %148 : vector<16x96xf32>
    %150 = vector.extract_strided_slice %94 {offsets = [4, 0], sizes = [1, 96], strides = [1, 1]} : vector<5x96xf32> to vector<1x96xf32>
    %151 = vector.broadcast %150 : vector<1x96xf32> to vector<16x96xf32>
    %152 = arith.addf %149, %151 : vector<16x96xf32>
    %cst_56 = arith.constant 0.000000e+00 : f32
    %153 = vector.broadcast %cst_56 : f32 to vector<16x96xf32>
    %154 = arith.maximumf %152, %153 : vector<16x96xf32>
    %155 = vector.extract_strided_slice %154 {offsets = [0, 0], sizes = [16, 32], strides = [1, 1]} : vector<16x96xf32> to vector<16x32xf32>
    %156 = vector.extract_strided_slice %154 {offsets = [0, 32], sizes = [16, 32], strides = [1, 1]} : vector<16x96xf32> to vector<16x32xf32>
    %157 = arith.addf %155, %156 : vector<16x32xf32>
    %158 = vector.extract_strided_slice %154 {offsets = [0, 64], sizes = [16, 32], strides = [1, 1]} : vector<16x96xf32> to vector<16x32xf32>
    %159 = arith.addf %157, %158 : vector<16x32xf32>
    %cst_57 = arith.constant 0.333333343 : f32
    %160 = vector.broadcast %cst_57 : f32 to vector<16x32xf32>
    %161 = arith.mulf %159, %160 : vector<16x32xf32>
    %cst_58 = arith.constant dense<0.000000e+00> : vector<32xf32>
    %162 = vector.multi_reduction <add>, %161, %cst_58 [0] : vector<16x32xf32> to vector<32xf32>
    %163 = vector.shape_cast %162 : vector<32xf32> to vector<1x32xf32>
    %cst_59 = arith.constant 1.600000e+01 : f32
    %164 = vector.broadcast %cst_59 : f32 to vector<1x32xf32>
    %165 = arith.divf %163, %164 : vector<1x32xf32>
    %166 = vector.broadcast %165 : vector<1x32xf32> to vector<16x32xf32>
    %167 = arith.subf %161, %166 : vector<16x32xf32>
    %168 = arith.mulf %167, %167 : vector<16x32xf32>
    %cst_60 = arith.constant dense<0.000000e+00> : vector<32xf32>
    %169 = vector.multi_reduction <add>, %168, %cst_60 [0] : vector<16x32xf32> to vector<32xf32>
    %170 = vector.shape_cast %169 : vector<32xf32> to vector<1x32xf32>
    %cst_61 = arith.constant 1.600000e+01 : f32
    %171 = vector.broadcast %cst_61 : f32 to vector<1x32xf32>
    %172 = arith.divf %170, %171 : vector<1x32xf32>
    %cst_62 = arith.constant 9.99999974E-6 : f32
    %173 = vector.broadcast %cst_62 : f32 to vector<1x32xf32>
    %174 = arith.addf %172, %173 : vector<1x32xf32>
    %175 = math.rsqrt %174 : vector<1x32xf32>
    %176 = vector.broadcast %175 : vector<1x32xf32> to vector<16x32xf32>
    %177 = arith.mulf %167, %176 : vector<16x32xf32>
    %cst_63 = arith.constant 0.000000e+00 : f32
    %178 = vector.broadcast %cst_63 : f32 to vector<16x32xf32>
    %179 = arith.maximumf %177, %178 : vector<16x32xf32>
    %c0_64 = arith.constant 0 : index
    %c0_65 = arith.constant 0 : index
    %180 = vector.load %arg10[%c0_64, %c0_65] : memref<32x3xbf16, #tpu.memory_space<vmem>>, vector<32x3xbf16>
    %c0_66 = arith.constant 0 : index
    %c0_67 = arith.constant 0 : index
    %181 = vector.load %arg11[%c0_66, %c0_67] : memref<12x3xbf16, #tpu.memory_space<vmem>>, vector<12x3xbf16>
    %c0_68 = arith.constant 0 : index
    %c0_69 = arith.constant 0 : index
    %182 = vector.load %arg12[%c0_68, %c0_69] : memref<32x15xbf16, #tpu.memory_space<vmem>>, vector<32x15xbf16>
    %c0_70 = arith.constant 0 : index
    %c0_71 = arith.constant 0 : index
    %183 = vector.load %arg13[%c0_70, %c0_71] : memref<5x3xf32, #tpu.memory_space<vmem>>, vector<5x3xf32>
    %184 = arith.truncf %179 : vector<16x32xf32> to vector<16x32xbf16>
    %cst_72 = arith.constant dense<0.000000e+00> : vector<16x15xf32>
    %185 = tpu.matmul %184, %182, %cst_72 {dimension_numbers = #tpu.dot_dimension_numbers<[1], [0], [0], [1], [0, 0, 1, 1], [], []>} : vector<16x32xbf16>, vector<32x15xbf16>, vector<16x15xf32> -> vector<16x15xf32>
    %cst_73 = arith.constant dense<0.000000e+00> : vector<16x3xf32>
    %186 = tpu.matmul %184, %180, %cst_73 {dimension_numbers = #tpu.dot_dimension_numbers<[1], [0], [0], [1], [0, 0, 1, 1], [], []>} : vector<16x32xbf16>, vector<32x3xbf16>, vector<16x3xf32> -> vector<16x3xf32>
    %187 = arith.truncf %186 : vector<16x3xf32> to vector<16x3xbf16>
    %cst_74 = arith.constant dense<0.000000e+00> : vector<16x3xf32>
    %188 = tpu.matmul %1, %187, %cst_74 {dimension_numbers = #tpu.dot_dimension_numbers<[1], [0], [0], [1], [0, 0, 1, 1], [], []>} : vector<16x16xbf16>, vector<16x3xbf16>, vector<16x3xf32> -> vector<16x3xf32>
    %189 = vector.extract_strided_slice %185 {offsets = [0, 0], sizes = [16, 3], strides = [1, 1]} : vector<16x15xf32> to vector<16x3xf32>
    %190 = arith.addf %188, %189 : vector<16x3xf32>
    %191 = vector.extract_strided_slice %183 {offsets = [0, 0], sizes = [1, 3], strides = [1, 1]} : vector<5x3xf32> to vector<1x3xf32>
    %192 = vector.broadcast %191 : vector<1x3xf32> to vector<16x3xf32>
    %193 = arith.addf %190, %192 : vector<16x3xf32>
    %cst_75 = arith.constant 0.000000e+00 : f32
    %194 = vector.broadcast %cst_75 : f32 to vector<16x3xf32>
    %195 = arith.maximumf %193, %194 : vector<16x3xf32>
    %196 = arith.truncf %195 : vector<16x3xf32> to vector<16x3xbf16>
    %197 = vector.extract_strided_slice %181 {offsets = [0, 0], sizes = [3, 3], strides = [1, 1]} : vector<12x3xbf16> to vector<3x3xbf16>
    %cst_76 = arith.constant dense<0.000000e+00> : vector<16x3xf32>
    %198 = tpu.matmul %196, %197, %cst_76 {dimension_numbers = #tpu.dot_dimension_numbers<[1], [0], [0], [1], [0, 0, 1, 1], [], []>} : vector<16x3xbf16>, vector<3x3xbf16>, vector<16x3xf32> -> vector<16x3xf32>
    %199 = arith.truncf %198 : vector<16x3xf32> to vector<16x3xbf16>
    %cst_77 = arith.constant dense<0.000000e+00> : vector<16x3xf32>
    %200 = tpu.matmul %1, %199, %cst_77 {dimension_numbers = #tpu.dot_dimension_numbers<[1], [0], [0], [1], [0, 0, 1, 1], [], []>} : vector<16x16xbf16>, vector<16x3xbf16>, vector<16x3xf32> -> vector<16x3xf32>
    %201 = vector.extract_strided_slice %185 {offsets = [0, 3], sizes = [16, 3], strides = [1, 1]} : vector<16x15xf32> to vector<16x3xf32>
    %202 = arith.addf %200, %201 : vector<16x3xf32>
    %203 = vector.extract_strided_slice %183 {offsets = [1, 0], sizes = [1, 3], strides = [1, 1]} : vector<5x3xf32> to vector<1x3xf32>
    %204 = vector.broadcast %203 : vector<1x3xf32> to vector<16x3xf32>
    %205 = arith.addf %202, %204 : vector<16x3xf32>
    %cst_78 = arith.constant 0.000000e+00 : f32
    %206 = vector.broadcast %cst_78 : f32 to vector<16x3xf32>
    %207 = arith.maximumf %205, %206 : vector<16x3xf32>
    %208 = arith.truncf %207 : vector<16x3xf32> to vector<16x3xbf16>
    %209 = vector.extract_strided_slice %181 {offsets = [3, 0], sizes = [3, 3], strides = [1, 1]} : vector<12x3xbf16> to vector<3x3xbf16>
    %cst_79 = arith.constant dense<0.000000e+00> : vector<16x3xf32>
    %210 = tpu.matmul %208, %209, %cst_79 {dimension_numbers = #tpu.dot_dimension_numbers<[1], [0], [0], [1], [0, 0, 1, 1], [], []>} : vector<16x3xbf16>, vector<3x3xbf16>, vector<16x3xf32> -> vector<16x3xf32>
    %211 = arith.truncf %210 : vector<16x3xf32> to vector<16x3xbf16>
    %cst_80 = arith.constant dense<0.000000e+00> : vector<16x3xf32>
    %212 = tpu.matmul %1, %211, %cst_80 {dimension_numbers = #tpu.dot_dimension_numbers<[1], [0], [0], [1], [0, 0, 1, 1], [], []>} : vector<16x16xbf16>, vector<16x3xbf16>, vector<16x3xf32> -> vector<16x3xf32>
    %213 = vector.extract_strided_slice %185 {offsets = [0, 6], sizes = [16, 3], strides = [1, 1]} : vector<16x15xf32> to vector<16x3xf32>
    %214 = arith.addf %212, %213 : vector<16x3xf32>
    %215 = vector.extract_strided_slice %183 {offsets = [2, 0], sizes = [1, 3], strides = [1, 1]} : vector<5x3xf32> to vector<1x3xf32>
    %216 = vector.broadcast %215 : vector<1x3xf32> to vector<16x3xf32>
    %217 = arith.addf %214, %216 : vector<16x3xf32>
    %cst_81 = arith.constant 0.000000e+00 : f32
    %218 = vector.broadcast %cst_81 : f32 to vector<16x3xf32>
    %219 = arith.maximumf %217, %218 : vector<16x3xf32>
    %220 = arith.truncf %219 : vector<16x3xf32> to vector<16x3xbf16>
    %221 = vector.extract_strided_slice %181 {offsets = [6, 0], sizes = [3, 3], strides = [1, 1]} : vector<12x3xbf16> to vector<3x3xbf16>
    %cst_82 = arith.constant dense<0.000000e+00> : vector<16x3xf32>
    %222 = tpu.matmul %220, %221, %cst_82 {dimension_numbers = #tpu.dot_dimension_numbers<[1], [0], [0], [1], [0, 0, 1, 1], [], []>} : vector<16x3xbf16>, vector<3x3xbf16>, vector<16x3xf32> -> vector<16x3xf32>
    %223 = arith.truncf %222 : vector<16x3xf32> to vector<16x3xbf16>
    %cst_83 = arith.constant dense<0.000000e+00> : vector<16x3xf32>
    %224 = tpu.matmul %1, %223, %cst_83 {dimension_numbers = #tpu.dot_dimension_numbers<[1], [0], [0], [1], [0, 0, 1, 1], [], []>} : vector<16x16xbf16>, vector<16x3xbf16>, vector<16x3xf32> -> vector<16x3xf32>
    %225 = vector.extract_strided_slice %185 {offsets = [0, 9], sizes = [16, 3], strides = [1, 1]} : vector<16x15xf32> to vector<16x3xf32>
    %226 = arith.addf %224, %225 : vector<16x3xf32>
    %227 = vector.extract_strided_slice %183 {offsets = [3, 0], sizes = [1, 3], strides = [1, 1]} : vector<5x3xf32> to vector<1x3xf32>
    %228 = vector.broadcast %227 : vector<1x3xf32> to vector<16x3xf32>
    %229 = arith.addf %226, %228 : vector<16x3xf32>
    %cst_84 = arith.constant 0.000000e+00 : f32
    %230 = vector.broadcast %cst_84 : f32 to vector<16x3xf32>
    %231 = arith.maximumf %229, %230 : vector<16x3xf32>
    %232 = arith.truncf %231 : vector<16x3xf32> to vector<16x3xbf16>
    %233 = vector.extract_strided_slice %181 {offsets = [9, 0], sizes = [3, 3], strides = [1, 1]} : vector<12x3xbf16> to vector<3x3xbf16>
    %cst_85 = arith.constant dense<0.000000e+00> : vector<16x3xf32>
    %234 = tpu.matmul %232, %233, %cst_85 {dimension_numbers = #tpu.dot_dimension_numbers<[1], [0], [0], [1], [0, 0, 1, 1], [], []>} : vector<16x3xbf16>, vector<3x3xbf16>, vector<16x3xf32> -> vector<16x3xf32>
    %235 = arith.truncf %234 : vector<16x3xf32> to vector<16x3xbf16>
    %cst_86 = arith.constant dense<0.000000e+00> : vector<16x3xf32>
    %236 = tpu.matmul %1, %235, %cst_86 {dimension_numbers = #tpu.dot_dimension_numbers<[1], [0], [0], [1], [0, 0, 1, 1], [], []>} : vector<16x16xbf16>, vector<16x3xbf16>, vector<16x3xf32> -> vector<16x3xf32>
    %237 = vector.extract_strided_slice %185 {offsets = [0, 12], sizes = [16, 3], strides = [1, 1]} : vector<16x15xf32> to vector<16x3xf32>
    %238 = arith.addf %236, %237 : vector<16x3xf32>
    %239 = vector.extract_strided_slice %183 {offsets = [4, 0], sizes = [1, 3], strides = [1, 1]} : vector<5x3xf32> to vector<1x3xf32>
    %240 = vector.broadcast %239 : vector<1x3xf32> to vector<16x3xf32>
    %241 = arith.addf %238, %240 : vector<16x3xf32>
    %cst_87 = arith.constant 0.000000e+00 : f32
    %242 = vector.broadcast %cst_87 : f32 to vector<16x3xf32>
    %243 = arith.maximumf %241, %242 : vector<16x3xf32>
    %244 = vector.extract_strided_slice %243 {offsets = [0, 0], sizes = [16, 1], strides = [1, 1]} : vector<16x3xf32> to vector<16x1xf32>
    %245 = vector.extract_strided_slice %243 {offsets = [0, 1], sizes = [16, 1], strides = [1, 1]} : vector<16x3xf32> to vector<16x1xf32>
    %246 = arith.addf %244, %245 : vector<16x1xf32>
    %247 = vector.extract_strided_slice %243 {offsets = [0, 2], sizes = [16, 1], strides = [1, 1]} : vector<16x3xf32> to vector<16x1xf32>
    %248 = arith.addf %246, %247 : vector<16x1xf32>
    %cst_88 = arith.constant 0.333333343 : f32
    %249 = vector.broadcast %cst_88 : f32 to vector<16x1xf32>
    %250 = arith.mulf %248, %249 : vector<16x1xf32>
    %251 = tpu.iota {dimensions = array<i32: 0>} : vector<16x16xi32>
    %252 = tpu.iota {dimensions = array<i32: 1>} : vector<16x16xi32>
    %253 = arith.cmpi eq, %251, %252 : vector<16x16xi32>
    %254 = vector.shape_cast %250 : vector<16x1xf32> to vector<16x1xf32>
    %255 = vector.broadcast %254 : vector<16x1xf32> to vector<16x16xf32>
    %cst_89 = arith.constant 0.000000e+00 : f32
    %256 = vector.broadcast %cst_89 : f32 to vector<16x16xf32>
    %257 = arith.select %253, %255, %256 : vector<16x16xi1>, vector<16x16xf32>
    %cst_90 = arith.constant dense<0.000000e+00> : vector<16xf32>
    %258 = vector.multi_reduction <add>, %257, %cst_90 [0] : vector<16x16xf32> to vector<16xf32>
    %259 = vector.shape_cast %258 : vector<16xf32> to vector<1x16xf32>
    %cst_91 = arith.constant dense<0.000000e+00> : vector<1xf32>
    %260 = vector.multi_reduction <add>, %259, %cst_91 [1] : vector<1x16xf32> to vector<1xf32>
    %261 = vector.shape_cast %260 : vector<1xf32> to vector<1x1xf32>
    %cst_92 = arith.constant 1.600000e+01 : f32
    %262 = vector.broadcast %cst_92 : f32 to vector<1x1xf32>
    %263 = arith.divf %261, %262 : vector<1x1xf32>
    %264 = vector.broadcast %263 : vector<1x1xf32> to vector<1x16xf32>
    %265 = arith.subf %259, %264 : vector<1x16xf32>
    %266 = arith.mulf %265, %265 : vector<1x16xf32>
    %cst_93 = arith.constant dense<0.000000e+00> : vector<1xf32>
    %267 = vector.multi_reduction <add>, %266, %cst_93 [1] : vector<1x16xf32> to vector<1xf32>
    %268 = vector.shape_cast %267 : vector<1xf32> to vector<1x1xf32>
    %cst_94 = arith.constant 1.600000e+01 : f32
    %269 = vector.broadcast %cst_94 : f32 to vector<1x1xf32>
    %270 = arith.divf %268, %269 : vector<1x1xf32>
    %cst_95 = arith.constant 9.99999974E-6 : f32
    %271 = vector.broadcast %cst_95 : f32 to vector<1x1xf32>
    %272 = arith.addf %270, %271 : vector<1x1xf32>
    %273 = math.rsqrt %272 : vector<1x1xf32>
    %274 = vector.broadcast %273 : vector<1x1xf32> to vector<1x16xf32>
    %275 = arith.mulf %265, %274 : vector<1x16xf32>
    %cst_96 = arith.constant 0.000000e+00 : f32
    %276 = vector.broadcast %cst_96 : f32 to vector<1x16xf32>
    %277 = arith.maximumf %275, %276 : vector<1x16xf32>
    %c0_97 = arith.constant 0 : index
    %c0_98 = arith.constant 0 : index
    %278 = memref.load %arg14[%c0_97, %c0_98] : memref<1x1xf32, #tpu.memory_space<smem>>
    %279 = vector.broadcast %278 : f32 to vector<1x16xf32>
    %280 = arith.mulf %277, %279 : vector<1x16xf32>
    %c0_99 = arith.constant 0 : index
    %c0_100 = arith.constant 0 : index
    %281 = memref.load %arg15[%c0_99, %c0_100] : memref<1x1xf32, #tpu.memory_space<smem>>
    %282 = vector.broadcast %281 : f32 to vector<1x16xf32>
    %283 = arith.addf %280, %282 : vector<1x16xf32>
    %c0_101 = arith.constant 0 : index
    %c0_102 = arith.constant 0 : index
    %284 = vector.load %arg16[%c0_101, %c0_102] : memref<1x16xf32, #tpu.memory_space<vmem>>, vector<1x16xf32>
    tpu.vector_store %arg16[%c0_101, %c0_102], %283 {strides = array<i32>} : memref<1x16xf32, #tpu.memory_space<vmem>>, vector<1x16xf32>,
    %cst_103 = arith.constant dense<0xFF800000> : vector<1xf32>
    %285 = vector.multi_reduction <maximumf>, %283, %cst_103 [1] : vector<1x16xf32> to vector<1xf32>
    %286 = vector.shape_cast %285 : vector<1xf32> to vector<1x1xf32>
    %c0_104 = arith.constant 0 : index
    %c0_105 = arith.constant 0 : index
    %287 = vector.load %arg17[%c0_104, %c0_105] : memref<1x1xf32, #tpu.memory_space<vmem>>, vector<1x1xf32>
    tpu.vector_store %arg17[%c0_104, %c0_105], %286 {strides = array<i32>} : memref<1x1xf32, #tpu.memory_space<vmem>>, vector<1x1xf32>,
    return
  }
}

</mosaic_0001>

<bundles_post_ra>
// kernel: gnn_arma_forward.1
= control target key start
LH: loop header
LB: loop body
LE: loop exit
PB: predicated region body
PF: predicated region fallthrough
CT: control target
= control target key end

     0   :  { %s3896_s0 = inlined_call_operand.vmem [shape: f32[16,2], index: 0, kind: input, shape index: {}]   ;;  %s3897_s1 = inlined_call_operand.vmem [shape: bf16[16,16], index: 1, kind: input, shape index: {}]   ;;  %s3898_s2 = inlined_call_operand.vmem [shape: bf16[2,96], index: 2, kind: input, shape index: {}]   ;;  %s3899_s3 = inlined_call_operand.vmem [shape: bf16[384,96], index: 3, kind: input, shape index: {}]   ;;  %s3900_s4 = inlined_call_operand.vmem [shape: bf16[2,480], index: 4, kind: input, shape index: {}]   ;;  %s3901_s5 = inlined_call_operand.vmem [shape: f32[5,96], index: 5, kind: input, shape index: {}]   ;;  %s3902_s6 = inlined_call_operand.vmem [shape: bf16[32,96], index: 6, kind: input, shape index: {}]   ;;  %s3903_s7 = inlined_call_operand.vmem [shape: bf16[384,96], index: 7, kind: input, shape index: {}]   ;;  %s3904_s8 = inlined_call_operand.vmem [shape: bf16[32,480], index: 8, kind: input, shape index: {}]   ;;  %s3905_s9 = inlined_call_operand.vmem [shape: f32[5,96], index: 9, kind: input, shape index: {}]   ;;  %s3906_s10 = inlined_call_operand.vmem [shape: bf16[32,3], index: 10, kind: input, shape index: {}]   ;;  %s3907_s11 = inlined_call_operand.vmem [shape: bf16[12,3], index: 11, kind: input, shape index: {}]   ;;  %s3908_s12 = inlined_call_operand.vmem [shape: bf16[32,15], index: 12, kind: input, shape index: {}]   ;;  %s3909_s13 = inlined_call_operand.vmem [shape: f32[5,3], index: 13, kind: input, shape index: {}]   ;;  %s3910_s14 = inlined_call_operand.<no memory space> [shape: f32[1,1], index: 14, kind: input, shape index: {}]   ;;  %s3911_s15 = inlined_call_operand.<no memory space> [shape: f32[1,1], index: 15, kind: input, shape index: {}]   ;;  %s3912_s16 = inlined_call_operand.hbm [shape: f32[1,16], index: 16, kind: output, shape index: {0}]   ;;  %s3913_s17 = inlined_call_operand.hbm [shape: f32[1,1], index: 17, kind: output, shape index: {1}]  }
   0x1   :  { %3916 = sst [smem:[#allocation10_spill]] %s3896_s0 }
   0x2   :  { %3917 = sst [smem:[#allocation11_spill]] %s3897_s1 }
   0x3   :  { %25 = vsyncpa [#allocation5], 0  ;;  %v2584_v0 = vld.sshfl [vmem:[%s3900_s4] sm:$0x33 pattern:$0x75316420]  ;;  %v128_v1 = vlaneseq }
   0x4   :  { %v3208_v2 = vmov 1966171168   ;;  %vm145_vm0 = vcmask 1040384   ;;  %v64_v4 = vld [vmem:[%s3898_s2] sm:$0x1]  ;;  %v3209_v6 = vmov 0   ;;  %v124_v7 = vcombine.high %v2584_v0, %v2584_v0 }
   0x5   :  { %v126_v3 = vunpack.c.l.s4 %v3208_v2  ;;  %v3321_v5 = vshrl.u32 %v128_v1, 7  ;;  %190 = vmatprep.mubr.bf16.mxu0 %v3209_v6  ;;  %vm141_vm1 = vcmask 15360   ;;  %233 = vmatprep.mubr.bf16.mxu1 %v3209_v6  ;;  %v245_v9 = vsel %vm145_vm0, %v64_v4, 0  ;;  %s3918_s2 = sld [smem:[#allocation10_spill]] }
   0x6   :  { %3081 = vset.pattern.permute.xlu0 %v3209_v6  ;;  %3082 = vset.pattern.permute.xlu1 %v3209_v6  ;;  %v3210_v19 = vmov 0.0   ;;  %vm3211_vm2 = vmmov 0  }
   0x7   :  { %v127_v8 = vunpack.c.0.s8 %v126_v3 }
   0x9   :  { %v130_v12 = vsub.s32 %v127_v8, %v3321_v5 }
   0xb   :  { %v60_v10 = vld [vmem:[%s3918_s2] sm:$0xff]  ;;  %v61_v11 = vld [vmem:[%s3918_s2 + $0x8] sm:$0xff]  ;;  %v138_v13 = vrot.slane %v124_v7, %v130_v12  ;;  %v131_v14 = vrot.slane %v2584_v0, %v130_v12 }
   0xc   :  { %v115_v16 = vpack.c.bf16 %v61_v11, %v60_v10 }
   0xd   :  { %2585 = vmatprep.subr.msk.bf16.mxu0 %vm145_vm0, %v138_v13  ;;  %v147_v15 = vsel %vm145_vm0, %v131_v14, 0  ;;  %v140_v17 = vcombine.high %v138_v13, %v138_v13  ;;  %v139_v18 = vcombine.high %v131_v14, %v131_v14 }
   0xe   :  { %159 = vmatpush1.bf16.msra.mxu0 %v147_v15 }
   0xf   :  { %2793 = vmatprep.subr.bf16.mxu0 %v3210_v19  ;;  %2587 = vmatprep.subr.msk.bf16.mxu1 %vm145_vm0, %v140_v17  ;;  %v153_v20 = vsel %vm145_vm0, %v139_v18, 0 }
  0x10   :  { %202 = vmatpush1.bf16.msra.mxu1 %v153_v20 }
  0x11   :  { %2586 = vmatmul.mubr.msk.bf16.vlgmr.msra.gmra.mrb[0].mxu0 %vm141_vm1, %v115_v16  ;;  %2799 = vmatprep.subr.bf16.mxu1 %v3210_v19 }
  0x12   :  { %2794 = vmatpush3.bf16.msra.mxu0 %v245_v9  ;;  %2795 = vmatprep.mubr.msk.bf16.mxu0 %vm3211_vm2, %v3210_v19 }
  0x13   :  { %2588 = vmatmul.mubr.msk.bf16.vlgmr.msra.gmra.mrb[0].mxu1 %vm141_vm1, %v115_v16  ;;  %2805 = vmatprep.subr.bf16.mxu0 %v3210_v19 }
  0x14   :  { %2801 = vmatprep.mubr.msk.bf16.mxu1 %vm3211_vm2, %v3210_v19 }
  0x19   :  { %2796 = vmatmul.mubr.msk.bf16.vlgmr.msra.gmra.mrb[4].mxu0 %vm141_vm1, %v115_v16 }
  0x1a   :  { %2817 = vmatprep.mubr.msk.bf16.mxu0 %vm3211_vm2, %v3210_v19 }
  0x1b   :  { %26 = vsyncpa [#allocation7], 0  ;;  %s3212_s30 = smov 32   ;;  %v3084_v23 = vld [vmem:[%s3899_s3] sm:$0xff]   ;;  %v3085_v28 = vld [vmem:[%s3899_s3 + $0x8] sm:$0xff]   ;;  %s3213_s23 = smov 64  }
  0x1c   :  { %2806 = vmatpush3.bf16.msra.mxu0 %v3084_v23  ;;  %v3086_v31 = vld [vmem:[%s3899_s3 + $0x10] sm:$0xff]   ;;  %s3919_s26 = sld [smem:[#allocation11_spill]]  ;;  %vm294_vm3 = vcmask 130048   ;;  %s3214_s27 = smov 96   ;;  %v3087_v38 = vld [vmem:[%s3899_s3 + $0x18] sm:$0xff]   ;;  %v3088_v39 = vld [vmem:[%s3899_s3 + $0x20] sm:$0xff]  }
  0x1d   :  { %2807 = vmatprep.subr.bf16.mxu0 %v3210_v19  ;;  %v3089_v40 = vld [vmem:[%s3899_s3 + $0x28] sm:$0xff]   ;;  %v3400_v41 = vsub.s32 0, %v3321_v5  ;;  %v3405_v42 = vld [vmem:[%s3901_s5] sm:$0x1f]  ;;  %vm384_vm4 = vcmask 785408   ;;  %v3090_v60 = vld [vmem:[%s3899_s3 + $0x30] sm:$0xff]  }
  0x1e   :  { %v3091_v61 = vld [vmem:[%s3899_s3 + $0x38] sm:$0xff]   ;;  %v3092_v62 = vld [vmem:[%s3899_s3 + $0x40] sm:$0xff]   ;;  %v3093_v63 = vld [vmem:[%s3899_s3 + $0x48] sm:$0xff]   ;;  %v3442_v7 = vsub.s32 1, %v3321_v5  ;;  %vm442_vm5 = vcmask 261120   ;;  %vm588_vm6 = vcmask 523264  }
  0x1f   :  { %v342_v43 = vrot.slane %v3405_v42, %v3400_v41  ;;  %v3094_v0 = vld [vmem:[%s3899_s3 + $0x50] sm:$0xff]   ;;  %v3095_v2 = vld [vmem:[%s3899_s3 + $0x58] sm:$0xff]   ;;  %s3218_s18 = smov 116   ;;  %vm2041_vm7 = vcmask 1041408   ;;  %vm2037_vm8 = vcmask 23552   ;;  %vm2549_vm11 = vcmask 122880  }
  0x20   :  { %2808 = vmatpush3.bf16.msra.mxu0 %v3085_v28  ;;  %v491_v10 = vrot.slane %v3405_v42, %v3442_v7  ;;  %s3222_s4 = smov [#allocation4]  }
  0x21   :  { %2809 = vmatprep.subr.bf16.mxu0 %v3210_v19 }
  0x22   :  { %v3375_v37 = vld [vmem:[%s3919_s26] sm:$0xff]  }
  0x24   :  { %2810 = vmatpush3.bf16.msra.mxu0 %v3086_v31 }
  0x25   :  { %2811 = vmatprep.subr.bf16.mxu0 %v3210_v19 }
  0x28   :  { %2812 = vmatpush3.bf16.msra.mxu0 %v3087_v38  ;;  %v3101_v38 = vld [vmem:[%s3899_s3 + $0x88] sm:$0xff]  }
  0x29   :  { %2813 = vmatprep.subr.bf16.mxu0 %v3210_v19 }
  0x2c   :  { %2814 = vmatpush3.bf16.msra.mxu0 %v3088_v39 }
  0x2d   :  { %2815 = vmatprep.subr.bf16.mxu0 %v3210_v19 }
  0x30   :  { %2816 = vmatpush3.bf16.msra.mxu0 %v3089_v40 }
  0x31   :  { %2843 = vmatprep.subr.bf16.mxu0 %v3210_v19 }
  0xe4   :  { %v192_v21 = vpop.f32.mrb[0].mxu0 }
  0xe5   :  { %434 = vrot.lane.b32.xlu0 %v192_v21, %s3212_s30  ;;  %v194_v22 = vpop.f32.mrb[1].mxu0 }
  0xe6   :  { %v196_v24 = vpop.f32.mrb[2].mxu0  ;;  %v235_v25 = vpop.f32.mrb[0].mxu1 }
  0xe7   :  { %438 = vrot.lane.b32.xlu1 %v196_v24, %s3212_s30  ;;  %v198_v26 = vpop.f32.mrb[3].mxu0  ;;  %v3356_v27 = vpop.f32.mrb[1].mxu1 }
  0xe8   :  { %v239_v29 = vpop.f32.mrb[2].mxu1 }
  0xe9   :  { %436 = vrot.lane.b32.xlu0 %v194_v22, %s3212_s30  ;;  %v3363_v30 = vpop.f32.mrb[3].mxu1 }
  0xeb   :  { %440 = vrot.lane.b32.xlu1 %v198_v26, %s3212_s30 }
  0xec   :  { %v281_v32 = vpop.f32.mrb[4].mxu0 }
  0xed   :  { %580 = vrot.lane.b32.xlu0 %v194_v22, %s3213_s23  ;;  %v2797_v33 = vpop.f32.mrb[5].mxu0 }
  0xee   :  { %v284_v34 = vpop.f32.mrb[6].mxu0  ;;  %v3097_v33 = vld [vmem:[%s3899_s3 + $0x68] sm:$0xff]  }
  0xef   :  { %v288_v35 = vpack.c.bf16 %v284_v34, %v281_v32  ;;  %582 = vrot.lane.b32.xlu1 %v235_v25, %s3213_s23  ;;  %v2798_v36 = vpop.f32.mrb[7].mxu0  ;;  %v3096_v32 = vld [vmem:[%s3899_s3 + $0x60] sm:$0xff]   ;;  %v3098_v34 = vld [vmem:[%s3899_s3 + $0x70] sm:$0xff]  }
  0xf0   :  { %v3100_v36 = vld [vmem:[%s3899_s3 + $0x80] sm:$0xff]  }
  0xf1   :  { %584 = vrot.lane.b32.xlu0 %v198_v26, %s3213_s23  ;;  %2800 = vmatpush3.bf16.msra.mxu1 %v288_v35  ;;  %v3099_v35 = vld [vmem:[%s3899_s3 + $0x78] sm:$0xff]  }
  0xf2   :  { %2821 = vmatprep.subr.bf16.mxu1 %v3210_v19 }
  0xf3   :  { %586 = vrot.lane.b32.xlu1 %v239_v29, %s3213_s23 }
  0xf4   :  { %2802 = vmatmul.mubr.msk.bf16.vlgmr.msra.gmra.mrb[4].mxu1 %vm294_vm3, %v3375_v37 }
  0xf5   :  { %724 = vrot.lane.b32.xlu0 %v235_v25, %s3214_s27  ;;  %2823 = vmatprep.mubr.msk.bf16.mxu1 %vm3211_vm2, %v3210_v19 }
  0xf7   :  { %726 = vrot.lane.b32.xlu1 %v239_v29, %s3214_s27 }
 0x157   :  { %v435_v3 = vpop.permute.xlu0 %434 }
 0x159   :  { %v439_v4 = vpop.permute.xlu1 %438 }
 0x15b   :  { %v437_v8 = vpop.permute.xlu0 %436 }
 0x15c   :  { %v443_v11 = vsel %vm442_vm5, %v435_v3, %v437_v8  ;;  %v3103_v3 = vld [vmem:[%s3899_s3 + $0x98] sm:$0xff]   ;;  %v3105_v8 = vld [vmem:[%s3899_s3 + $0xa8] sm:$0xff]  }
 0x15d   :  { %v441_v9 = vpop.permute.xlu1 %440 }
 0x15e   :  { %v444_v15 = vsel %vm442_vm5, %v439_v4, %v441_v9  ;;  %v3104_v4 = vld [vmem:[%s3899_s3 + $0xa0] sm:$0xff]   ;;  %v3106_v9 = vld [vmem:[%s3899_s3 + $0xb0] sm:$0xff]  }
 0x15f   :  { %v581_v40 = vpop.permute.xlu0 %580 }
 0x161   :  { %v583_v39 = vpop.permute.xlu1 %582 }
 0x1c7   :  { %v332_v44 = vpop.f32.mrb[4].mxu1 }
 0x1c8   :  { %v333_v45 = vadd.f32 %v332_v44, %v192_v21  ;;  %v2803_v46 = vpop.f32.mrb[5].mxu1  ;;  %v587_v44 = vpop.permute.xlu1 %586 }
 0x1c9   :  { %v335_v47 = vpop.f32.mrb[6].mxu1  ;;  %v589_v46 = vsel %vm588_vm6, %v581_v40, %v583_v39 }
 0x1ca   :  { %v343_v48 = vadd.f32 %v342_v43, %v333_v45  ;;  %v336_v49 = vadd.f32 %v335_v47, %v196_v24  ;;  %v2804_v50 = vpop.f32.mrb[7].mxu1 }
 0x1cc   :  { %v344_v51 = vadd.f32 %v342_v43, %v336_v49  ;;  %v345_v52 = vmax.f32 %v343_v48, 0.0  ;;  %v3481_v43 = vsub.s32 2, %v3321_v5  ;;  %v585_v48 = vpop.permute.xlu0 %584 }
 0x1ce   :  { %v346_v53 = vmax.f32 %v344_v51, 0.0  ;;  %v637_v45 = vrot.slane %v3405_v42, %v3481_v43  ;;  %v590_v51 = vsel %vm588_vm6, %v585_v48, %v587_v44 }
 0x1d0   :  { %v347_v54 = vpack.c.bf16 %v346_v53, %v345_v52 }
 0x1d2   :  { %2818 = vmatmul.mubr.msk.bf16.vlgmr.msra.gmra.mrb[8].mxu0 %vm384_vm4, %v347_v54 }
 0x1d3   :  { %2845 = vmatprep.mubr.msk.bf16.mxu0 %vm3211_vm2, %v3210_v19 }
 0x2a5   :  { %v422_v55 = vpop.f32.mrb[8].mxu0 }
 0x2a6   :  { %v2819_v56 = vpop.f32.mrb[9].mxu0 }
 0x2a7   :  { %v425_v57 = vpop.f32.mrb[10].mxu0 }
 0x2a8   :  { %v429_v58 = vpack.c.bf16 %v425_v57, %v422_v55  ;;  %v2820_v59 = vpop.f32.mrb[11].mxu0 }
 0x2aa   :  { %2822 = vmatpush3.bf16.msra.mxu1 %v429_v58 }
 0x2ab   :  { %2827 = vmatprep.subr.bf16.mxu1 %v3210_v19 }
 0x2ad   :  { %2824 = vmatmul.mubr.msk.bf16.vlgmr.msra.gmra.mrb[8].mxu1 %vm294_vm3, %v3375_v37 }
 0x2ae   :  { %2828 = vmatpush3.bf16.msra.mxu1 %v3090_v60  ;;  %2839 = vmatprep.mubr.msk.bf16.mxu1 %vm3211_vm2, %v3210_v19 }
 0x2af   :  { %2829 = vmatprep.subr.bf16.mxu1 %v3210_v19 }
 0x2b2   :  { %2830 = vmatpush3.bf16.msra.mxu1 %v3091_v61 }
 0x2b3   :  { %2831 = vmatprep.subr.bf16.mxu1 %v3210_v19 }
 0x2b6   :  { %2832 = vmatpush3.bf16.msra.mxu1 %v3092_v62 }
 0x2b7   :  { %2833 = vmatprep.subr.bf16.mxu1 %v3210_v19 }
 0x2ba   :  { %2834 = vmatpush3.bf16.msra.mxu1 %v3093_v63 }
 0x2bb   :  { %2835 = vmatprep.subr.bf16.mxu1 %v3210_v19 }
 0x2be   :  { %2836 = vmatpush3.bf16.msra.mxu1 %v3094_v0 }
 0x2bf   :  { %2837 = vmatprep.subr.bf16.mxu1 %v3210_v19 }
 0x2c2   :  { %2838 = vmatpush3.bf16.msra.mxu1 %v3095_v2  ;;  %v3102_v2 = vld [vmem:[%s3899_s3 + $0x90] sm:$0xff]  }
 0x2c3   :  { %2865 = vmatprep.subr.bf16.mxu1 %v3210_v19 }
 0x380   :  { %v481_v12 = vpop.f32.mrb[8].mxu1 }
 0x381   :  { %v482_v13 = vadd.f32 %v481_v12, %v443_v11  ;;  %v2825_v14 = vpop.f32.mrb[9].mxu1  ;;  %v3519_v11 = vsub.s32 3, %v3321_v5 }
 0x382   :  { %v484_v16 = vpop.f32.mrb[10].mxu1 }
 0x383   :  { %v492_v17 = vadd.f32 %v491_v10, %v482_v13  ;;  %v485_v18 = vadd.f32 %v484_v16, %v444_v15  ;;  %v2826_v20 = vpop.f32.mrb[11].mxu1  ;;  %v774_v12 = vrot.slane %v3405_v42, %v3519_v11  ;;  %v725_v13 = vpop.permute.xlu0 %724 }
 0x385   :  { %v493_v21 = vadd.f32 %v491_v10, %v485_v18  ;;  %v494_v22 = vmax.f32 %v492_v17, 0.0  ;;  %v3107_v10 = vld [vmem:[%s3899_s3 + $0xb8] sm:$0xff]   ;;  %v727_v17 = vpop.permute.xlu1 %726 }
 0x387   :  { %v495_v23 = vmax.f32 %v493_v21, 0.0 }
 0x389   :  { %v496_v24 = vpack.c.bf16 %v495_v23, %v494_v22 }
 0x38b   :  { %2840 = vmatmul.mubr.msk.bf16.vlgmr.msra.gmra.mrb[12].mxu1 %vm384_vm4, %v496_v24 }
 0x38c   :  { %2867 = vmatprep.mubr.msk.bf16.mxu1 %vm3211_vm2, %v3210_v19 }
 0x45e   :  { %v570_v25 = vpop.f32.mrb[12].mxu1 }
 0x45f   :  { %v2841_v26 = vpop.f32.mrb[13].mxu1 }
 0x460   :  { %v573_v28 = vpop.f32.mrb[14].mxu1 }
 0x461   :  { %v577_v29 = vpack.c.bf16 %v573_v28, %v570_v25  ;;  %v2842_v31 = vpop.f32.mrb[15].mxu1 }
 0x463   :  { %2844 = vmatpush3.bf16.msra.mxu0 %v577_v29 }
 0x464   :  { %2849 = vmatprep.subr.bf16.mxu0 %v3210_v19 }
 0x466   :  { %2846 = vmatmul.mubr.msk.bf16.vlgmr.msra.gmra.mrb[12].mxu0 %vm294_vm3, %v3375_v37 }
 0x467   :  { %2850 = vmatpush3.bf16.msra.mxu0 %v3096_v32  ;;  %2861 = vmatprep.mubr.msk.bf16.mxu0 %vm3211_vm2, %v3210_v19 }
 0x468   :  { %2851 = vmatprep.subr.bf16.mxu0 %v3210_v19 }
 0x46b   :  { %2852 = vmatpush3.bf16.msra.mxu0 %v3097_v33 }
 0x46c   :  { %2853 = vmatprep.subr.bf16.mxu0 %v3210_v19 }
 0x46f   :  { %2854 = vmatpush3.bf16.msra.mxu0 %v3098_v34  ;;  %v3529_v34 = vsub.s32 4, %v3321_v5 }
 0x470   :  { %2855 = vmatprep.subr.bf16.mxu0 %v3210_v19 }
 0x473   :  { %2856 = vmatpush3.bf16.msra.mxu0 %v3099_v35  ;;  %v905_v35 = vrot.slane %v3405_v42, %v3529_v34  ;;  %v3111_v42 = vld [vmem:[%s3904_s8 + $0x8] ss:$16 sps:$4 sm:$0xff]  }
 0x474   :  { %2857 = vmatprep.subr.bf16.mxu0 %v3210_v19 }
 0x477   :  { %2858 = vmatpush3.bf16.msra.mxu0 %v3100_v36 }
 0x478   :  { %2859 = vmatprep.subr.bf16.mxu0 %v3210_v19 }
 0x47b   :  { %2860 = vmatpush3.bf16.msra.mxu0 %v3101_v38 }
 0x47c   :  { %2887 = vmatprep.subr.bf16.mxu0 %v3210_v19 }
 0x539   :  { %v627_v47 = vpop.f32.mrb[12].mxu0 }
 0x53a   :  { %v628_v49 = vadd.f32 %v627_v47, %v589_v46  ;;  %v2847_v50 = vpop.f32.mrb[13].mxu0 }
 0x53b   :  { %v630_v52 = vpop.f32.mrb[14].mxu0  ;;  %v3116_v50 = vld [vmem:[%s3904_s8 + $0x24] ss:$16 sps:$4 sm:$0xff]  }
 0x53c   :  { %v638_v53 = vadd.f32 %v637_v45, %v628_v49  ;;  %v631_v54 = vadd.f32 %v630_v52, %v590_v51  ;;  %v2848_v55 = vpop.f32.mrb[15].mxu0  ;;  %v3119_v51 = vld [vmem:[%s3904_s8 + $0x2c] ss:$16 sps:$4 sm:$0xff]   ;;  %v3114_v52 = vld [vmem:[%s3904_s8 + $0x20] ss:$16 sps:$4 sm:$0xff]  }
 0x53e   :  { %v639_v56 = vadd.f32 %v637_v45, %v631_v54  ;;  %v640_v57 = vmax.f32 %v638_v53, 0.0  ;;  %v3117_v53 = vld [vmem:[%s3904_s8 + $0x28] ss:$16 sps:$4 sm:$0xff]  }
 0x540   :  { %v641_v58 = vmax.f32 %v639_v56, 0.0 }
 0x542   :  { %v642_v59 = vpack.c.bf16 %v641_v58, %v640_v57 }
 0x544   :  { %2862 = vmatmul.mubr.msk.bf16.vlgmr.msra.gmra.mrb[16].mxu0 %vm384_vm4, %v642_v59 }
 0x545   :  { %2889 = vmatprep.mubr.msk.bf16.mxu0 %vm3211_vm2, %v3210_v19 }
 0x617   :  { %v716_v60 = vpop.f32.mrb[16].mxu0 }
 0x618   :  { %v2863_v61 = vpop.f32.mrb[17].mxu0 }
 0x619   :  { %v719_v62 = vpop.f32.mrb[18].mxu0 }
 0x61a   :  { %v723_v63 = vpack.c.bf16 %v719_v62, %v716_v60  ;;  %v2864_v0 = vpop.f32.mrb[19].mxu0 }
 0x61c   :  { %2866 = vmatpush3.bf16.msra.mxu1 %v723_v63 }
 0x61d   :  { %2871 = vmatprep.subr.bf16.mxu1 %v3210_v19 }
 0x61f   :  { %2868 = vmatmul.mubr.msk.bf16.vlgmr.msra.gmra.mrb[16].mxu1 %vm294_vm3, %v3375_v37 }
 0x620   :  { %2872 = vmatpush3.bf16.msra.mxu1 %v3102_v2  ;;  %2883 = vmatprep.mubr.msk.bf16.mxu1 %vm3211_vm2, %v3210_v19 }
 0x621   :  { %2873 = vmatprep.subr.bf16.mxu1 %v3210_v19 }
 0x624   :  { %2874 = vmatpush3.bf16.msra.mxu1 %v3103_v3 }
 0x625   :  { %2875 = vmatprep.subr.bf16.mxu1 %v3210_v19 }
 0x628   :  { %2876 = vmatpush3.bf16.msra.mxu1 %v3104_v4 }
 0x629   :  { %2877 = vmatprep.subr.bf16.mxu1 %v3210_v19 }
 0x62c   :  { %2878 = vmatpush3.bf16.msra.mxu1 %v3105_v8 }
 0x62d   :  { %2879 = vmatprep.subr.bf16.mxu1 %v3210_v19 }
 0x630   :  { %2880 = vmatpush3.bf16.msra.mxu1 %v3106_v9 }
 0x631   :  { %2881 = vmatprep.subr.bf16.mxu1 %v3210_v19 }
 0x634   :  { %2882 = vmatpush3.bf16.msra.mxu1 %v3107_v10 }
 0x6f2   :  { %v764_v14 = vpop.f32.mrb[16].mxu1 }
 0x6f3   :  { %v765_v15 = vadd.f32 %v764_v14, %v725_v13  ;;  %v2869_v16 = vpop.f32.mrb[17].mxu1 }
 0x6f4   :  { %v767_v18 = vpop.f32.mrb[18].mxu1 }
 0x6f5   :  { %v775_v20 = vadd.f32 %v774_v12, %v765_v15  ;;  %v768_v21 = vadd.f32 %v767_v18, %v727_v17  ;;  %v2870_v22 = vpop.f32.mrb[19].mxu1 }
 0x6f7   :  { %v776_v23 = vadd.f32 %v774_v12, %v768_v21  ;;  %v777_v24 = vmax.f32 %v775_v20, 0.0 }
 0x6f9   :  { %v778_v25 = vmax.f32 %v776_v23, 0.0 }
 0x6fb   :  { %v779_v26 = vpack.c.bf16 %v778_v25, %v777_v24 }
 0x6fd   :  { %2884 = vmatmul.mubr.msk.bf16.vlgmr.msra.gmra.mrb[20].mxu1 %vm384_vm4, %v779_v26 }
 0x6fe   :  { %1141 = vmatprep.mubr.bf16.mxu1 %v3209_v6 }
 0x7d0   :  { %v853_v28 = vpop.f32.mrb[20].mxu1 }
 0x7d1   :  { %v2885_v29 = vpop.f32.mrb[21].mxu1 }
 0x7d2   :  { %v856_v31 = vpop.f32.mrb[22].mxu1 }
 0x7d3   :  { %v860_v32 = vpack.c.bf16 %v856_v31, %v853_v28  ;;  %v2886_v33 = vpop.f32.mrb[23].mxu1 }
 0x7d5   :  { %2888 = vmatpush3.bf16.msra.mxu0 %v860_v32 }
 0x7d8   :  { %2890 = vmatmul.mubr.msk.bf16.vlgmr.msra.gmra.mrb[20].mxu0 %vm294_vm3, %v3375_v37 }
 0x7d9   :  { %1098 = vmatprep.mubr.bf16.mxu0 %v3209_v6  ;;  %v3110_v6 = vld [vmem:[%s3904_s8 + $0x4] ss:$16 sps:$4 sm:$0xff]  }
 0x7da   :  { %1066 = vmatprep.subr.bf16.mxu0 %v3110_v6 }
 0x8ab   :  { %v895_v36 = vpop.f32.mrb[20].mxu0 }
 0x8ac   :  { %v896_v38 = vadd.f32 %v895_v36, %v3356_v27  ;;  %v2891_v39 = vpop.f32.mrb[21].mxu0  ;;  %v3113_v27 = vld [vmem:[%s3904_s8 + $0xc] ss:$16 sps:$4 sm:$0xff]  }
 0x8ad   :  { %v898_v40 = vpop.f32.mrb[22].mxu0  ;;  %1109 = vmatprep.subr.bf16.mxu1 %v3113_v27 }
 0x8ae   :  { %v906_v44 = vadd.f32 %v905_v35, %v896_v38  ;;  %v899_v45 = vadd.f32 %v898_v40, %v3363_v30  ;;  %v2892_v46 = vpop.f32.mrb[23].mxu0  ;;  %v3108_v30 = vld [vmem:[%s3904_s8] ss:$16 sps:$4 sm:$0xff]   ;;  %1110 = vmatpush1.bf16.msra.mxu1 %v3111_v42 }
 0x8af   :  { %1067 = vmatpush1.bf16.msra.mxu0 %v3108_v30  ;;  %1111 = vmatprep.subr.bf16.mxu1 %v3119_v51  ;;  %v3120_v40 = vld [vmem:[%s3902_s6] sm:$0xff]   ;;  %v3123_v51 = vld [vmem:[%s3903_s7 + $0x8] sm:$0xff]  }
 0x8b0   :  { %v908_v47 = vmax.f32 %v906_v44, 0.0  ;;  %v907_v48 = vadd.f32 %v905_v35, %v899_v45  ;;  %1068 = vmatprep.subr.bf16.mxu0 %v3116_v50  ;;  %v3121_v45 = vld [vmem:[%s3902_s6 + $0x8] sm:$0xff]   ;;  %v3122_v50 = vld [vmem:[%s3903_s7] sm:$0xff]   ;;  %s3217_s6 = smov 119  }
 0x8b2   :  { %v909_v49 = vmax.f32 %v907_v48, 0.0  ;;  %912 = vrot.lane.b32.xlu0 %v908_v47, %s3214_s27  ;;  %1112 = vmatpush1.bf16.msra.mxu1 %v3117_v53 }
 0x8b3   :  { %1069 = vmatpush1.bf16.msra.mxu0 %v3114_v52  ;;  %2901 = vmatprep.subr.bf16.mxu1 %v3210_v19 }
 0x8b4   :  { %914 = vrot.lane.b32.xlu1 %v909_v49, %s3214_s27  ;;  %2893 = vmatprep.subr.bf16.mxu0 %v3210_v19 }
 0x8b6   :  { %920 = vrot.lane.b32.xlu0 %v908_v47, %s3213_s23 }
 0x8b8   :  { %922 = vrot.lane.b32.xlu1 %v909_v49, %s3213_s23 }
 0x924   :  { %v913_v54 = vpop.permute.xlu0 %912 }
 0x925   :  { %v918_v56 = vadd.f32 %v913_v54, %v908_v47 }
 0x926   :  { %v915_v55 = vpop.permute.xlu1 %914 }
 0x927   :  { %v919_v58 = vadd.f32 %v915_v55, %v909_v49  ;;  %v3124_v55 = vld [vmem:[%s3903_s7 + $0x10] sm:$0xff]  }
 0x928   :  { %v921_v57 = vpop.permute.xlu0 %920 }
 0x929   :  { %v926_v59 = vadd.f32 %v921_v57, %v918_v56 }
 0x92a   :  { %v923_v60 = vpop.permute.xlu1 %922 }
 0x92b   :  { %v928_v61 = vmul.f32 0.33333334, %v926_v59  ;;  %v927_v62 = vadd.f32 %v923_v60, %v919_v58  ;;  %v3125_v58 = vld [vmem:[%s3903_s7 + $0x18] sm:$0xff]   ;;  %v3126_v59 = vld [vmem:[%s3903_s7 + $0x20] sm:$0xff]   ;;  %v3127_v60 = vld [vmem:[%s3903_s7 + $0x28] sm:$0xff]  }
 0x92d   :  { %v929_v63 = vmul.f32 0.33333334, %v927_v62  ;;  %v930_v0 = vsel %vm442_vm5, %v928_v61, 0.0 }
 0x92f   :  { %v931_v2 = vsel %vm442_vm5, %v929_v63, 0.0 }
 0x930   :  { %v932_v3 = vadd.f32 %v931_v2, %v930_v0 }
 0x932   :  { %v933_v4 = vrot.slane %v932_v3, 4 }
 0x934   :  { %v934_v8 = vadd.f32 %v933_v4, %v932_v3 }
 0x936   :  { %v935_v9 = vrot.slane %v934_v8, 2 }
 0x938   :  { %v936_v10 = vadd.f32 %v935_v9, %v934_v8 }
 0x93a   :  { %v937_v12 = vrot.slane %v936_v10, 1 }
 0x93c   :  { %v938_v13 = vadd.f32 %v937_v12, %v936_v10 }
 0x93e   :  { %v940_v14 = vmul.f32 0.0625, %v938_v13 }
 0x940   :  { %v941_v15 = vsub.f32 %v928_v61, %v940_v14  ;;  %v942_v16 = vsub.f32 %v929_v63, %v940_v14  ;;  %v3632_v61 = vld [vmem:[%s3905_s9] sm:$0x1f] }
 0x941   :  { %v1250_v62 = vrot.slane %v3632_v61, %v3400_v41 }
 0x942   :  { %v943_v17 = vmul.f32 %v941_v15, %v941_v15  ;;  %v944_v18 = vmul.f32 %v942_v16, %v942_v16 }
 0x944   :  { %v945_v20 = vsel %vm442_vm5, %v943_v17, 0.0  ;;  %v946_v21 = vsel %vm442_vm5, %v944_v18, 0.0 }
 0x945   :  { %v947_v22 = vadd.f32 %v946_v21, %v945_v20  ;;  %v3128_v21 = vld [vmem:[%s3903_s7 + $0x30] sm:$0xff]  }
 0x947   :  { %v948_v23 = vrot.slane %v947_v22, 4 }
 0x949   :  { %v949_v24 = vadd.f32 %v948_v23, %v947_v22  ;;  %v3129_v22 = vld [vmem:[%s3903_s7 + $0x38] sm:$0xff]   ;;  %v3130_v23 = vld [vmem:[%s3903_s7 + $0x40] sm:$0xff]  }
 0x94b   :  { %v950_v25 = vrot.slane %v949_v24, 2 }
 0x94d   :  { %v951_v26 = vadd.f32 %v950_v25, %v949_v24  ;;  %v3131_v24 = vld [vmem:[%s3903_s7 + $0x48] sm:$0xff]   ;;  %v3132_v25 = vld [vmem:[%s3903_s7 + $0x50] sm:$0xff]  }
 0x94f   :  { %v952_v28 = vrot.slane %v951_v26, 1 }
 0x951   :  { %v953_v29 = vadd.f32 %v952_v28, %v951_v26  ;;  %v3133_v26 = vld [vmem:[%s3903_s7 + $0x58] sm:$0xff]  }
 0x953   :  { %v954_v31 = vmul.f32 0.0625, %v953_v29 }
 0x955   :  { %v955_v32 = vadd.f32 1e-05, %v954_v31 }
 0x957   :  { %3153 = vrsqrt.f32 %v955_v32 }
 0x961   :  { %v3154_v33 = vpop.eup %3153 }
 0x962   :  { %v957_v35 = vmul.f32 %v3154_v33, %v941_v15  ;;  %v958_v36 = vmul.f32 %v3154_v33, %v942_v16  ;;  %v1397_v33 = vrot.slane %v3632_v61, %v3442_v7 }
 0x964   :  { %v959_v38 = vmax.f32 %v957_v35, 0.0  ;;  %v960_v39 = vmax.f32 %v958_v36, 0.0 }
 0x966   :  { %v1022_v44 = vpack.c.bf16 %v960_v39, %v959_v38 }
 0x968   :  { %2632 = vmatmul.mubr.msk.bf16.vlgmr.msra.gmra.mrb[24].mxu0 %vm442_vm5, %v1022_v44  ;;  %2633 = vmatmul.mubr.msk.bf16.vlgmr.msra.gmra.mrb[24].mxu1 %vm442_vm5, %v1022_v44 }
 0x969   :  { %2894 = vmatpush3.bf16.msra.mxu0 %v3120_v40  ;;  %2897 = vmatprep.mubr.msk.bf16.mxu0 %vm3211_vm2, %v3210_v19 }
 0x96a   :  { %2895 = vmatprep.subr.bf16.mxu0 %v3210_v19  ;;  %2903 = vmatprep.mubr.msk.bf16.mxu1 %vm3211_vm2, %v3210_v19 }
 0x96d   :  { %2896 = vmatpush3.bf16.msra.mxu0 %v3121_v45 }
 0x96e   :  { %2907 = vmatprep.subr.bf16.mxu0 %v3210_v19 }
 0x970   :  { %2898 = vmatmul.mubr.msk.bf16.vlgmr.msra.gmra.mrb[28].mxu0 %vm442_vm5, %v1022_v44 }
 0x971   :  { %2919 = vmatprep.mubr.msk.bf16.mxu0 %vm3211_vm2, %v3210_v19  ;;  %2908 = vmatpush3.bf16.msra.mxu0 %v3122_v50 }
 0x972   :  { %2909 = vmatprep.subr.bf16.mxu0 %v3210_v19 }
 0x975   :  { %2910 = vmatpush3.bf16.msra.mxu0 %v3123_v51 }
 0x976   :  { %2911 = vmatprep.subr.bf16.mxu0 %v3210_v19 }
 0x979   :  { %2912 = vmatpush3.bf16.msra.mxu0 %v3124_v55  ;;  %v3134_v55 = vld [vmem:[%s3903_s7 + $0x60] sm:$0xff]  }
 0x97a   :  { %2913 = vmatprep.subr.bf16.mxu0 %v3210_v19 }
 0x97d   :  { %2914 = vmatpush3.bf16.msra.mxu0 %v3125_v58  ;;  %v3137_v58 = vld [vmem:[%s3903_s7 + $0x78] sm:$0xff]  }
 0x97e   :  { %2915 = vmatprep.subr.bf16.mxu0 %v3210_v19 }
 0x981   :  { %2916 = vmatpush3.bf16.msra.mxu0 %v3126_v59  ;;  %v3138_v59 = vld [vmem:[%s3903_s7 + $0x80] sm:$0xff]  }
 0x982   :  { %2917 = vmatprep.subr.bf16.mxu0 %v3210_v19 }
 0x985   :  { %2918 = vmatpush3.bf16.msra.mxu0 %v3127_v60  ;;  %v3139_v60 = vld [vmem:[%s3903_s7 + $0x88] sm:$0xff]  }
 0x986   :  { %2945 = vmatprep.subr.bf16.mxu0 %v3210_v19 }
 0xa3b   :  { %v1100_v46 = vpop.f32.mrb[24].mxu0  ;;  %v1143_v47 = vpop.f32.mrb[24].mxu1 }
 0xa3c   :  { %v3586_v48 = vpop.f32.mrb[25].mxu1  ;;  %1341 = vrot.lane.b32.xlu0 %v1100_v46, %s3212_s30  ;;  %v1102_v49 = vpop.f32.mrb[25].mxu0 }
 0xa3d   :  { %v1147_v6 = vpop.f32.mrb[26].mxu1  ;;  %1343 = vrot.lane.b32.xlu1 %v1102_v49, %s3212_s30  ;;  %v1104_v27 = vpop.f32.mrb[26].mxu0 }
 0xa3e   :  { %v1106_v30 = vpop.f32.mrb[27].mxu0  ;;  %v3590_v42 = vpop.f32.mrb[27].mxu1 }
 0xa40   :  { %1345 = vrot.lane.b32.xlu0 %v1104_v27, %s3212_s30 }
 0xa41   :  { %1347 = vrot.lane.b32.xlu1 %v1106_v30, %s3212_s30  ;;  %s3221_s30 = smov 126  }
 0xa43   :  { %v1198_v52 = vpop.f32.mrb[28].mxu0 }
 0xa44   :  { %1486 = vrot.lane.b32.xlu0 %v1102_v49, %s3213_s23  ;;  %v2899_v53 = vpop.f32.mrb[29].mxu0 }
 0xa45   :  { %1488 = vrot.lane.b32.xlu1 %v1143_v47, %s3213_s23  ;;  %v1201_v54 = vpop.f32.mrb[30].mxu0 }
 0xa46   :  { %v1205_v56 = vpack.c.bf16 %v1201_v54, %v1198_v52  ;;  %v2900_v57 = vpop.f32.mrb[31].mxu0 }
 0xa47   :  { %v3136_v57 = vld [vmem:[%s3903_s7 + $0x70] sm:$0xff]  }
 0xa48   :  { %1490 = vrot.lane.b32.xlu0 %v1106_v30, %s3213_s23  ;;  %2902 = vmatpush3.bf16.msra.mxu1 %v1205_v56  ;;  %v3135_v56 = vld [vmem:[%s3903_s7 + $0x68] sm:$0xff]  }
 0xa49   :  { %1492 = vrot.lane.b32.xlu1 %v1147_v6, %s3213_s23  ;;  %2923 = vmatprep.subr.bf16.mxu1 %v3210_v19 }
 0xa4b   :  { %2904 = vmatmul.mubr.msk.bf16.vlgmr.msra.gmra.mrb[28].mxu1 %vm294_vm3, %v3375_v37 }
 0xa4c   :  { %1629 = vrot.lane.b32.xlu0 %v1143_v47, %s3214_s27  ;;  %2925 = vmatprep.mubr.msk.bf16.mxu1 %vm3211_vm2, %v3210_v19 }
 0xa4d   :  { %1631 = vrot.lane.b32.xlu1 %v1147_v6, %s3214_s27 }
 0xaae   :  { %v1342_v28 = vpop.permute.xlu0 %1341 }
 0xaaf   :  { %v1344_v29 = vpop.permute.xlu1 %1343 }
 0xab0   :  { %v1349_v35 = vsel %vm442_vm5, %v1342_v28, %v1344_v29  ;;  %v3140_v28 = vld [vmem:[%s3903_s7 + $0x90] sm:$0xff]   ;;  %v3141_v29 = vld [vmem:[%s3903_s7 + $0x98] sm:$0xff]  }
 0xab2   :  { %v1346_v31 = vpop.permute.xlu0 %1345 }
 0xab3   :  { %v1348_v32 = vpop.permute.xlu1 %1347 }
 0xab4   :  { %v1350_v40 = vsel %vm442_vm5, %v1346_v31, %v1348_v32  ;;  %v3142_v31 = vld [vmem:[%s3903_s7 + $0xa0] sm:$0xff]   ;;  %v3143_v32 = vld [vmem:[%s3903_s7 + $0xa8] sm:$0xff]  }
 0xb1e   :  { %v1240_v63 = vpop.f32.mrb[28].mxu1 }
 0xb1f   :  { %v1241_v0 = vadd.f32 %v1240_v63, %v1100_v46  ;;  %v2905_v2 = vpop.f32.mrb[29].mxu1  ;;  %v1489_v63 = vpop.permute.xlu1 %1488 }
 0xb20   :  { %v1243_v3 = vpop.f32.mrb[30].mxu1 }
 0xb21   :  { %v1251_v4 = vadd.f32 %v1250_v62, %v1241_v0  ;;  %v1244_v8 = vadd.f32 %v1243_v3, %v1104_v27  ;;  %v2906_v9 = vpop.f32.mrb[31].mxu1  ;;  %v1542_v3 = vrot.slane %v3632_v61, %v3481_v43 }
 0xb23   :  { %v1252_v10 = vadd.f32 %v1250_v62, %v1244_v8  ;;  %v1253_v12 = vmax.f32 %v1251_v4, 0.0  ;;  %v1487_v62 = vpop.permute.xlu0 %1486  ;;  %v1493_v2 = vpop.permute.xlu1 %1492 }
 0xb24   :  { %v1494_v4 = vsel %vm588_vm6, %v1487_v62, %v1489_v63 }
 0xb25   :  { %v1254_v13 = vmax.f32 %v1252_v10, 0.0 }
 0xb27   :  { %v1255_v14 = vpack.c.bf16 %v1254_v13, %v1253_v12  ;;  %v1491_v0 = vpop.permute.xlu0 %1490 }
 0xb28   :  { %v1495_v12 = vsel %vm588_vm6, %v1491_v0, %v1493_v2 }
 0xb29   :  { %2920 = vmatmul.mubr.msk.bf16.vlgmr.msra.gmra.mrb[32].mxu0 %vm384_vm4, %v1255_v14 }
 0xb2a   :  { %2947 = vmatprep.mubr.msk.bf16.mxu0 %vm3211_vm2, %v3210_v19 }
 0xbfc   :  { %v1329_v15 = vpop.f32.mrb[32].mxu0 }
 0xbfd   :  { %v2921_v16 = vpop.f32.mrb[33].mxu0 }
 0xbfe   :  { %v1332_v17 = vpop.f32.mrb[34].mxu0 }
 0xbff   :  { %v1336_v18 = vpack.c.bf16 %v1332_v17, %v1329_v15  ;;  %v2922_v20 = vpop.f32.mrb[35].mxu0 }
 0xc01   :  { %2924 = vmatpush3.bf16.msra.mxu1 %v1336_v18 }
 0xc02   :  { %2929 = vmatprep.subr.bf16.mxu1 %v3210_v19 }
 0xc04   :  { %2926 = vmatmul.mubr.msk.bf16.vlgmr.msra.gmra.mrb[32].mxu1 %vm294_vm3, %v3375_v37 }
 0xc05   :  { %2930 = vmatpush3.bf16.msra.mxu1 %v3128_v21  ;;  %2941 = vmatprep.mubr.msk.bf16.mxu1 %vm3211_vm2, %v3210_v19 }
 0xc06   :  { %2931 = vmatprep.subr.bf16.mxu1 %v3210_v19 }
 0xc09   :  { %2932 = vmatpush3.bf16.msra.mxu1 %v3129_v22 }
 0xc0a   :  { %2933 = vmatprep.subr.bf16.mxu1 %v3210_v19 }
 0xc0d   :  { %2934 = vmatpush3.bf16.msra.mxu1 %v3130_v23 }
 0xc0e   :  { %2935 = vmatprep.subr.bf16.mxu1 %v3210_v19 }
 0xc11   :  { %2936 = vmatpush3.bf16.msra.mxu1 %v3131_v24 }
 0xc12   :  { %2937 = vmatprep.subr.bf16.mxu1 %v3210_v19 }
 0xc15   :  { %2938 = vmatpush3.bf16.msra.mxu1 %v3132_v25 }
 0xc16   :  { %2939 = vmatprep.subr.bf16.mxu1 %v3210_v19 }
 0xc19   :  { %2940 = vmatpush3.bf16.msra.mxu1 %v3133_v26 }
 0xc1a   :  { %2967 = vmatprep.subr.bf16.mxu1 %v3210_v19 }
 0xcd7   :  { %v1387_v36 = vpop.f32.mrb[32].mxu1 }
 0xcd8   :  { %v1388_v38 = vadd.f32 %v1387_v36, %v1349_v35  ;;  %v2927_v39 = vpop.f32.mrb[33].mxu1  ;;  %v3145_v35 = vld [vmem:[%s3903_s7 + $0xb8] sm:$0xff]   ;;  %v1679_v36 = vrot.slane %v3632_v61, %v3519_v11 }
 0xcd9   :  { %v1390_v44 = vpop.f32.mrb[34].mxu1 }
 0xcda   :  { %v1398_v45 = vadd.f32 %v1397_v33, %v1388_v38  ;;  %v1391_v46 = vadd.f32 %v1390_v44, %v1350_v40  ;;  %v2928_v47 = vpop.f32.mrb[35].mxu1  ;;  %v1630_v38 = vpop.permute.xlu0 %1629 }
 0xcdc   :  { %v1399_v49 = vadd.f32 %v1397_v33, %v1391_v46  ;;  %v1400_v6 = vmax.f32 %v1398_v45, 0.0  ;;  %v3144_v33 = vld [vmem:[%s3903_s7 + $0xb0] sm:$0xff]   ;;  %v1632_v45 = vpop.permute.xlu1 %1631  ;;  %s2562_s7 = sshll.u32 %s3222_s4, 4  ;;  %s2563_s7 = int_to_ptr.vmem [resolvable:$true] %s2562_s7 }
 0xcdd   :  { %s3160_s28 = scalar_lea.vmem %s2563_s7, 16  ;;  %s3164_s3 = scalar_lea.vmem %s2563_s7, 32 }
 0xcde   :  { %v1401_v27 = vmax.f32 %v1399_v49, 0.0  ;;  %p3161_p0 = scmp.ne.s32.totalorder %s2563_s7, %s3160_s28  ;;  %p3165_p1 = scmp.lt.s32.totalorder %s2563_s7, %s2563_s7 }
 0xcdf   :  { %p3166_p2 = scmp.lt.s32.totalorder %s3164_s3, %s3160_s28 }
 0xce0   :  { %v1402_v30 = vpack.c.bf16 %v1401_v27, %v1400_v6 }
 0xce1   :  { %p3167_p3 = por %p3166_p2, %p3165_p1 }
 0xce2   :  { %2942 = vmatmul.mubr.msk.bf16.vlgmr.msra.gmra.mrb[36].mxu1 %vm384_vm4, %v1402_v30 }
 0xce3   :  { %2969 = vmatprep.mubr.msk.bf16.mxu1 %vm3211_vm2, %v3210_v19  ;;  %p3168_p4 = pnand %p3167_p3, %p3161_p0 }
 0xdb5   :  { %v1476_v50 = vpop.f32.mrb[36].mxu1 }
 0xdb6   :  { %v2943_v51 = vpop.f32.mrb[37].mxu1 }
 0xdb7   :  { %v1479_v52 = vpop.f32.mrb[38].mxu1 }
 0xdb8   :  { %v1483_v53 = vpack.c.bf16 %v1479_v52, %v1476_v50  ;;  %v2944_v54 = vpop.f32.mrb[39].mxu1 }
 0xdba   :  { %2946 = vmatpush3.bf16.msra.mxu0 %v1483_v53 }
 0xdbb   :  { %2951 = vmatprep.subr.bf16.mxu0 %v3210_v19 }
 0xdbd   :  { %2948 = vmatmul.mubr.msk.bf16.vlgmr.msra.gmra.mrb[36].mxu0 %vm294_vm3, %v3375_v37 }
 0xdbe   :  { %2952 = vmatpush3.bf16.msra.mxu0 %v3134_v55  ;;  %2963 = vmatprep.mubr.msk.bf16.mxu0 %vm3211_vm2, %v3210_v19 }
 0xdbf   :  { %2953 = vmatprep.subr.bf16.mxu0 %v3210_v19 }
 0xdc2   :  { %2954 = vmatpush3.bf16.msra.mxu0 %v3135_v56 }
 0xdc3   :  { %2955 = vmatprep.subr.bf16.mxu0 %v3210_v19 }
 0xdc6   :  { %2956 = vmatpush3.bf16.msra.mxu0 %v3136_v57  ;;  %v1810_v57 = vrot.slane %v3632_v61, %v3529_v34  ;;  %v3149_v61 = vld [vmem:[%s3906_s10 + $0x8] sm:$0xff]  }
 0xdc7   :  { %2957 = vmatprep.subr.bf16.mxu0 %v3210_v19 }
 0xdca   :  { %2958 = vmatpush3.bf16.msra.mxu0 %v3137_v58 }
 0xdcb   :  { %2959 = vmatprep.subr.bf16.mxu0 %v3210_v19 }
 0xdce   :  { %2960 = vmatpush3.bf16.msra.mxu0 %v3138_v59 }
 0xdcf   :  { %2961 = vmatprep.subr.bf16.mxu0 %v3210_v19 }
 0xdd2   :  { %2962 = vmatpush3.bf16.msra.mxu0 %v3139_v60 }
 0xdd3   :  { %2989 = vmatprep.subr.bf16.mxu0 %v3210_v19 }
 0xe90   :  { %v1532_v8 = vpop.f32.mrb[36].mxu0 }
 0xe91   :  { %v1533_v9 = vadd.f32 %v1532_v8, %v1494_v4  ;;  %v2949_v10 = vpop.f32.mrb[37].mxu0 }
 0xe92   :  { %v1535_v13 = vpop.f32.mrb[38].mxu0 }
 0xe93   :  { %v1543_v14 = vadd.f32 %v1542_v3, %v1533_v9  ;;  %v1536_v15 = vadd.f32 %v1535_v13, %v1495_v12  ;;  %v2950_v16 = vpop.f32.mrb[39].mxu0 }
 0xe95   :  { %v1544_v17 = vadd.f32 %v1542_v3, %v1536_v15  ;;  %v1545_v18 = vmax.f32 %v1543_v14, 0.0 }
 0xe97   :  { %v1546_v20 = vmax.f32 %v1544_v17, 0.0 }
 0xe99   :  { %v1547_v21 = vpack.c.bf16 %v1546_v20, %v1545_v18 }
 0xe9b   :  { %2964 = vmatmul.mubr.msk.bf16.vlgmr.msra.gmra.mrb[40].mxu0 %vm384_vm4, %v1547_v21 }
 0xe9c   :  { %2991 = vmatprep.mubr.msk.bf16.mxu0 %vm3211_vm2, %v3210_v19 }
 0xf6e   :  { %v1621_v22 = vpop.f32.mrb[40].mxu0 }
 0xf6f   :  { %v2965_v23 = vpop.f32.mrb[41].mxu0 }
 0xf70   :  { %v1624_v24 = vpop.f32.mrb[42].mxu0 }
 0xf71   :  { %v1628_v25 = vpack.c.bf16 %v1624_v24, %v1621_v22  ;;  %v2966_v26 = vpop.f32.mrb[43].mxu0 }
 0xf73   :  { %2968 = vmatpush3.bf16.msra.mxu1 %v1628_v25 }
 0xf74   :  { %2973 = vmatprep.subr.bf16.mxu1 %v3210_v19 }
 0xf76   :  { %2970 = vmatmul.mubr.msk.bf16.vlgmr.msra.gmra.mrb[40].mxu1 %vm294_vm3, %v3375_v37 }
 0xf77   :  { %2974 = vmatpush3.bf16.msra.mxu1 %v3140_v28  ;;  %2985 = vmatprep.mubr.msk.bf16.mxu1 %vm3211_vm2, %v3210_v19 }
 0xf78   :  { %2975 = vmatprep.subr.bf16.mxu1 %v3210_v19 }
 0xf7b   :  { %2976 = vmatpush3.bf16.msra.mxu1 %v3141_v29 }
 0xf7c   :  { %2977 = vmatprep.subr.bf16.mxu1 %v3210_v19 }
 0xf7f   :  { %2978 = vmatpush3.bf16.msra.mxu1 %v3142_v31 }
 0xf80   :  { %2979 = vmatprep.subr.bf16.mxu1 %v3210_v19 }
 0xf83   :  { %2980 = vmatpush3.bf16.msra.mxu1 %v3143_v32 }
 0xf84   :  { %2981 = vmatprep.subr.bf16.mxu1 %v3210_v19 }
 0xf87   :  { %2982 = vmatpush3.bf16.msra.mxu1 %v3144_v33 }
 0xf88   :  { %2983 = vmatprep.subr.bf16.mxu1 %v3210_v19 }
 0xf8b   :  { %2984 = vmatpush3.bf16.msra.mxu1 %v3145_v35 }
 0xf8c   :  { %3003 = vmatprep.subr.bf16.mxu1 %v3210_v19 }
0x1049   :  { %v1669_v39 = vpop.f32.mrb[40].mxu1 }
0x104a   :  { %v1670_v40 = vadd.f32 %v1669_v39, %v1630_v38  ;;  %v2971_v44 = vpop.f32.mrb[41].mxu1 }
0x104b   :  { %v1672_v46 = vpop.f32.mrb[42].mxu1 }
0x104c   :  { %v1680_v47 = vadd.f32 %v1679_v36, %v1670_v40  ;;  %v1673_v49 = vadd.f32 %v1672_v46, %v1632_v45  ;;  %v2972_v6 = vpop.f32.mrb[43].mxu1 }
0x104e   :  { %v1681_v27 = vadd.f32 %v1679_v36, %v1673_v49  ;;  %v1682_v30 = vmax.f32 %v1680_v47, 0.0 }
0x1050   :  { %v1683_v50 = vmax.f32 %v1681_v27, 0.0 }
0x1052   :  { %v1684_v51 = vpack.c.bf16 %v1683_v50, %v1682_v30 }
0x1054   :  { %2986 = vmatmul.mubr.msk.bf16.vlgmr.msra.gmra.mrb[44].mxu1 %vm384_vm4, %v1684_v51 }
0x1055   :  { %3007 = vmatprep.mubr.msk.bf16.mxu1 %vm3211_vm2, %v3210_v19 }
0x1127   :  { %v1758_v52 = vpop.f32.mrb[44].mxu1 }
0x1128   :  { %v2987_v53 = vpop.f32.mrb[45].mxu1 }
0x1129   :  { %v1761_v54 = vpop.f32.mrb[46].mxu1 }
0x112a   :  { %v1765_v55 = vpack.c.bf16 %v1761_v54, %v1758_v52  ;;  %v2988_v56 = vpop.f32.mrb[47].mxu1 }
0x112c   :  { %2990 = vmatpush3.bf16.msra.mxu0 %v1765_v55 }
0x112d   :  { %2995 = vmatprep.subr.bf16.mxu0 %v3210_v19 }
0x112f   :  { %2992 = vmatmul.mubr.msk.bf16.vlgmr.msra.gmra.mrb[44].mxu0 %vm294_vm3, %v3375_v37  ;;  %v3146_v37 = vld [vmem:[%s3908_s12] sm:$0xff]  }
0x1130   :  { %2999 = vmatprep.mubr.msk.bf16.mxu0 %vm3211_vm2, %v3210_v19  ;;  %2996 = vmatpush3.bf16.msra.mxu0 %v3146_v37 }
0x1131   :  { %2997 = vmatprep.subr.bf16.mxu0 %v3210_v19 }
0x1202   :  { %v1800_v58 = vpop.f32.mrb[44].mxu0 }
0x1203   :  { %v1801_v59 = vadd.f32 %v1800_v58, %v3586_v48  ;;  %v2993_v60 = vpop.f32.mrb[45].mxu0  ;;  %v3147_v48 = vld [vmem:[%s3906_s10] sm:$0xff]   ;;  %s3215_s10 = smov 125  }
0x1204   :  { %v1803_v62 = vpop.f32.mrb[46].mxu0  ;;  %3004 = vmatpush3.bf16.msra.mxu1 %v3147_v48  ;;  %v3798_v48 = vld [vmem:[%s3907_s11] sm:$0xf] }
0x1205   :  { %v1811_v63 = vadd.f32 %v1810_v57, %v1801_v59  ;;  %v1804_v0 = vadd.f32 %v1803_v62, %v3590_v42  ;;  %v2994_v2 = vpop.f32.mrb[47].mxu0  ;;  %3005 = vmatprep.subr.bf16.mxu1 %v3210_v19  ;;  %v3148_v42 = vld [vmem:[%s3908_s12 + $0x8] sm:$0xff]   ;;  %s3216_s12 = smov 122  }
0x1206   :  { %2998 = vmatpush3.bf16.msra.mxu0 %v3148_v42 }
0x1207   :  { %v1813_v3 = vmax.f32 %v1811_v63, 0.0  ;;  %v1812_v4 = vadd.f32 %v1810_v57, %v1804_v0  ;;  %3011 = vmatprep.subr.bf16.mxu0 %v3210_v19 }
0x1208   :  { %3006 = vmatpush3.bf16.msra.mxu1 %v3149_v61 }
0x1209   :  { %v1814_v8 = vmax.f32 %v1812_v4, 0.0  ;;  %1817 = vrot.lane.b32.xlu0 %v1813_v3, %s3214_s27  ;;  %3017 = vmatprep.subr.bf16.mxu1 %v3210_v19  ;;  %v3788_v4 = vld [vmem:[%s3919_s26] sm:$0xff]  }
0x120b   :  { %1819 = vrot.lane.b32.xlu1 %v1814_v8, %s3214_s27 }
0x120d   :  { %1825 = vrot.lane.b32.xlu0 %v1813_v3, %s3213_s23 }
0x120f   :  { %1827 = vrot.lane.b32.xlu1 %v1814_v8, %s3213_s23 }
0x127b   :  { %v1818_v9 = vpop.permute.xlu0 %1817 }
0x127c   :  { %v1823_v12 = vadd.f32 %v1818_v9, %v1813_v3  ;;  %v3808_v9 = vld [vmem:[%s3909_s13] sm:$0x1f] }
0x127d   :  { %v1820_v10 = vpop.permute.xlu1 %1819 }
0x127e   :  { %v1824_v14 = vadd.f32 %v1820_v10, %v1814_v8  ;;  %v3219_v8 = vmov 65535   ;;  %v2031_v10 = vrot.slane %v3808_v9, %v3400_v41 }
0x127f   :  { %v1826_v13 = vpop.permute.xlu0 %1825  ;;  %v2042_v37 = vsel %vm145_vm0, 4294967295, %v3219_v8 }
0x1280   :  { %v1831_v15 = vadd.f32 %v1826_v13, %v1823_v12  ;;  %v3800_v42 = vsel %vm2041_vm7, %v2042_v37, 0 }
0x1281   :  { %v1828_v16 = vpop.permute.xlu1 %1827  ;;  %v2045_v61 = vand.u32 %v3800_v42, %v3798_v48 }
0x1282   :  { %v1833_v17 = vmul.f32 0.33333334, %v1831_v15  ;;  %v1832_v18 = vadd.f32 %v1828_v16, %v1824_v14 }
0x1284   :  { %v1834_v20 = vmul.f32 0.33333334, %v1832_v18  ;;  %v1835_v21 = vsel %vm442_vm5, %v1833_v17, 0.0 }
0x1286   :  { %v1836_v22 = vsel %vm442_vm5, %v1834_v20, 0.0 }
0x1287   :  { %v1837_v23 = vadd.f32 %v1836_v22, %v1835_v21 }
0x1289   :  { %v1838_v24 = vrot.slane %v1837_v23, 4 }
0x128b   :  { %v1839_v25 = vadd.f32 %v1838_v24, %v1837_v23 }
0x128d   :  { %v1840_v26 = vrot.slane %v1839_v25, 2 }
0x128f   :  { %v1841_v28 = vadd.f32 %v1840_v26, %v1839_v25 }
0x1291   :  { %v1842_v29 = vrot.slane %v1841_v28, 1 }
0x1293   :  { %v1843_v31 = vadd.f32 %v1842_v29, %v1841_v28  ;;  %v2679_v29 = vcombine.low %v3798_v48, %v3798_v48 }
0x1295   :  { %v1844_v32 = vmul.f32 0.0625, %v1843_v31  ;;  %v2151_v31 = vshrl.u32 %v2679_v29, 16 }
0x1297   :  { %v1845_v33 = vsub.f32 %v1833_v17, %v1844_v32  ;;  %v1846_v35 = vsub.f32 %v1834_v20, %v1844_v32  ;;  %v2154_v32 = vshll.u32 %v2679_v29, 16 }
0x1299   :  { %v1847_v36 = vmul.f32 %v1845_v33, %v1845_v33  ;;  %v1848_v38 = vmul.f32 %v1846_v35, %v1846_v35 }
0x129b   :  { %v1849_v39 = vsel %vm442_vm5, %v1847_v36, 0.0  ;;  %v1850_v40 = vsel %vm442_vm5, %v1848_v38, 0.0 }
0x129c   :  { %v1851_v44 = vadd.f32 %v1850_v40, %v1849_v39  ;;  %v2141_v39 = vrot.slane %v3808_v9, %v3442_v7 }
0x129e   :  { %v1852_v45 = vrot.slane %v1851_v44, 4 }
0x12a0   :  { %v1853_v46 = vadd.f32 %v1852_v45, %v1851_v44 }
0x12a2   :  { %v1854_v47 = vrot.slane %v1853_v46, 2 }
0x12a4   :  { %v1855_v49 = vadd.f32 %v1854_v47, %v1853_v46 }
0x12a6   :  { %v1856_v6 = vrot.slane %v1855_v49, 1 }
0x12a8   :  { %v1857_v27 = vadd.f32 %v1856_v6, %v1855_v49 }
0x12aa   :  { %v1858_v30 = vmul.f32 0.0625, %v1857_v27 }
0x12ac   :  { %v1859_v50 = vadd.f32 1e-05, %v1858_v30 }
0x12ae   :  { %3155 = vrsqrt.f32 %v1859_v50 }
0x12b8   :  { %v3156_v51 = vpop.eup %3155 }
0x12b9   :  { %v1861_v52 = vmul.f32 %v3156_v51, %v1845_v33  ;;  %v1862_v53 = vmul.f32 %v3156_v51, %v1846_v35  ;;  %v2153_v33 = vrot.slane %v2151_v31, 1  ;;  %v2156_v35 = vrot.slane %v2154_v32, 2 }
0x12bb   :  { %v1863_v54 = vmax.f32 %v1861_v52, 0.0  ;;  %v1864_v55 = vmax.f32 %v1862_v53, 0.0  ;;  %v2157_v36 = vor.u32 %v2156_v35, %v2153_v33 }
0x12bd   :  { %v1876_v56 = vpack.c.bf16 %v1864_v55, %v1863_v54  ;;  %v2162_v38 = vand.u32 %v2157_v36, %v3800_v42 }
0x12bf   :  { %3000 = vmatmul.mubr.msk.bf16.vlgmr.msra.gmra.mrb[48].mxu0 %vm442_vm5, %v1876_v56  ;;  %3008 = vmatmul.mubr.msk.bf16.vlgmr.msra.gmra.mrb[48].mxu1 %vm442_vm5, %v1876_v56 }
0x12c0   :  { %3013 = vmatprep.mubr.msk.bf16.mxu0 %vm3211_vm2, %v3210_v19  ;;  %3019 = vmatprep.mubr.msk.bf16.mxu1 %vm3211_vm2, %v3210_v19 }
0x12c1   :  { %3018 = vmatpush3.bf16.msra.mxu1 %v2045_v61 }
0x12c2   :  { %3029 = vmatprep.subr.bf16.mxu1 %v3210_v19 }
0x1392   :  { %v1926_v57 = vpop.f32.mrb[48].mxu0  ;;  %v1979_v58 = vpop.f32.mrb[48].mxu1 }
0x1393   :  { %v3009_v59 = vpop.f32.mrb[49].mxu1  ;;  %2091 = vrot.lane.b32.xlu0 %v1926_v57, %s3215_s10  ;;  %v3001_v60 = vpop.f32.mrb[49].mxu0 }
0x1394   :  { %v1929_v62 = vpop.f32.mrb[50].mxu0  ;;  %v1982_v63 = vpop.f32.mrb[50].mxu1 }
0x1395   :  { %v1986_v0 = vpack.c.bf16 %v1982_v63, %v1979_v58  ;;  %v3010_v2 = vpop.f32.mrb[51].mxu1  ;;  %2093 = vrot.lane.b32.xlu1 %v1929_v62, %s3215_s10  ;;  %v3002_v3 = vpop.f32.mrb[51].mxu0  ;;  %v1870_v58 = vld [vmem:[%s3907_s11 + $0x4] sm:$0x3]  ;;  %v2256_v63 = vrot.slane %v3808_v9, %v3481_v43  ;;  %s3220_s11 = smov 127  }
0x1396   :  { %v2682_v59 = vcombine.low %v3798_v48, %v1870_v58 }
0x1397   :  { %3012 = vmatpush3.bf16.msra.mxu0 %v1986_v0  ;;  %2206 = vrot.lane.b32.xlu0 %v1926_v57, %s3216_s12 }
0x1398   :  { %3023 = vmatprep.subr.bf16.mxu0 %v3210_v19  ;;  %v2265_v60 = vrot.slane %v2682_v59, 3 }
0x1399   :  { %2208 = vrot.lane.b32.xlu1 %v1929_v62, %s3216_s12 }
0x139a   :  { %3014 = vmatmul.mubr.msk.bf16.vlgmr.msra.gmra.mrb[52].mxu0 %vm294_vm3, %v3788_v4 }
0x139b   :  { %2314 = vrot.lane.b32.xlu0 %v1926_v57, %s3217_s6  ;;  %3025 = vmatprep.mubr.msk.bf16.mxu0 %vm3211_vm2, %v3210_v19 }
0x139d   :  { %2316 = vrot.lane.b32.xlu1 %v1929_v62, %s3217_s6 }
0x139f   :  { %2426 = vrot.lane.b32.xlu0 %v1926_v57, %s3218_s18 }
0x13a1   :  { %2428 = vrot.lane.b32.xlu1 %v1929_v62, %s3218_s18 }
0x1405   :  { %v2092_v40 = vpop.permute.xlu0 %2091 }
0x1407   :  { %v2094_v47 = vpop.permute.xlu1 %2093 }
0x1409   :  { %v2207_v0 = vpop.permute.xlu0 %2206 }
0x140b   :  { %v2209_v37 = vpop.permute.xlu1 %2208 }
0x140d   :  { %v2315_v29 = vpop.permute.xlu0 %2314 }
0x140f   :  { %v2317_v35 = vpop.permute.xlu1 %2316 }
0x146d   :  { %v2021_v12 = vpop.f32.mrb[52].mxu0 }
0x146e   :  { %v2022_v13 = vadd.f32 %v2021_v12, %v1926_v57  ;;  %v3015_v14 = vpop.f32.mrb[53].mxu0 }
0x146f   :  { %v2024_v15 = vpop.f32.mrb[54].mxu0 }
0x1470   :  { %v2032_v16 = vadd.f32 %v2031_v10, %v2022_v13  ;;  %v2025_v17 = vadd.f32 %v2024_v15, %v1929_v62  ;;  %v3016_v18 = vpop.f32.mrb[55].mxu0  ;;  %v2270_v62 = vand.u32 %v2265_v60, %v3800_v42 }
0x1472   :  { %v2033_v20 = vadd.f32 %v2031_v10, %v2025_v17  ;;  %v2034_v21 = vmax.f32 %v2032_v16, 0.0 }
0x1474   :  { %v2035_v22 = vmax.f32 %v2033_v20, 0.0 }
0x1476   :  { %v2036_v23 = vpack.c.bf16 %v2035_v22, %v2034_v21  ;;  %v2685_v22 = vcombine.low %v1870_v58, %v1870_v58 }
0x1478   :  { %3020 = vmatmul.mubr.msk.bf16.vlgmr.msra.gmra.mrb[52].mxu1 %vm2037_vm8, %v2036_v23  ;;  %v2374_v23 = vshll.u32 %v2685_v22, 16 }
0x1479   :  { %3031 = vmatprep.mubr.msk.bf16.mxu1 %vm3211_vm2, %v3210_v19  ;;  %3030 = vmatpush3.bf16.msra.mxu1 %v2162_v38 }
0x147a   :  { %3041 = vmatprep.subr.bf16.mxu1 %v3210_v19 }
0x154b   :  { %v2081_v24 = vpop.f32.mrb[52].mxu1 }
0x154c   :  { %v3021_v25 = vpop.f32.mrb[53].mxu1 }
0x154d   :  { %v2084_v41 = vpop.f32.mrb[54].mxu1  ;;  %v2376_v25 = vrot.slane %v2374_v23, 1 }
0x154e   :  { %v2088_v26 = vpack.c.bf16 %v2084_v41, %v2081_v24  ;;  %v3022_v28 = vpop.f32.mrb[55].mxu1  ;;  %v2372_v24 = vshrl.u32 %v2685_v22, 16 }
0x154f   :  { %v2364_v28 = vrot.slane %v3808_v9, %v3519_v11 }
0x1550   :  { %3024 = vmatpush3.bf16.msra.mxu0 %v2088_v26  ;;  %v2377_v41 = vor.u32 %v2376_v25, %v2372_v24 }
0x1551   :  { %3035 = vmatprep.subr.bf16.mxu0 %v3210_v19 }
0x1552   :  { %v2382_v26 = vand.u32 %v2377_v41, %v3800_v42 }
0x1553   :  { %3026 = vmatmul.mubr.msk.bf16.vlgmr.msra.gmra.mrb[56].mxu0 %vm294_vm3, %v3788_v4 }
0x1554   :  { %3037 = vmatprep.mubr.msk.bf16.mxu0 %vm3211_vm2, %v3210_v19 }
0x1626   :  { %v2131_v44 = vpop.f32.mrb[56].mxu0 }
0x1627   :  { %v2132_v45 = vadd.f32 %v2131_v44, %v2092_v40  ;;  %v3027_v46 = vpop.f32.mrb[57].mxu0 }
0x1628   :  { %v2134_v49 = vpop.f32.mrb[58].mxu0 }
0x1629   :  { %v2142_v6 = vadd.f32 %v2141_v39, %v2132_v45  ;;  %v2135_v27 = vadd.f32 %v2134_v49, %v2094_v47  ;;  %v3028_v30 = vpop.f32.mrb[59].mxu0 }
0x162a   :  { %v2427_v30 = vpop.permute.xlu0 %2426 }
0x162b   :  { %v2143_v50 = vadd.f32 %v2141_v39, %v2135_v27  ;;  %v2144_v51 = vmax.f32 %v2142_v6, 0.0  ;;  %v2476_v27 = vrot.slane %v3808_v9, %v3529_v34 }
0x162d   :  { %v2145_v52 = vmax.f32 %v2143_v50, 0.0 }
0x162f   :  { %v2146_v53 = vpack.c.bf16 %v2145_v52, %v2144_v51 }
0x1631   :  { %3032 = vmatmul.mubr.msk.bf16.vlgmr.msra.gmra.mrb[56].mxu1 %vm2037_vm8, %v2146_v53  ;;  %v2429_v53 = vpop.permute.xlu1 %2428 }
0x1632   :  { %3043 = vmatprep.mubr.msk.bf16.mxu1 %vm3211_vm2, %v3210_v19  ;;  %3042 = vmatpush3.bf16.msra.mxu1 %v2270_v62 }
0x1633   :  { %3053 = vmatprep.subr.bf16.mxu1 %v3210_v19 }
0x1704   :  { %v2198_v54 = vpop.f32.mrb[56].mxu1 }
0x1705   :  { %v3033_v7 = vpop.f32.mrb[57].mxu1 }
0x1706   :  { %v2201_v55 = vpop.f32.mrb[58].mxu1 }
0x1707   :  { %v2205_v56 = vpack.c.bf16 %v2201_v55, %v2198_v54  ;;  %v3034_v57 = vpop.f32.mrb[59].mxu1 }
0x1709   :  { %3036 = vmatpush3.bf16.msra.mxu0 %v2205_v56 }
0x170a   :  { %3047 = vmatprep.subr.bf16.mxu0 %v3210_v19 }
0x170c   :  { %3038 = vmatmul.mubr.msk.bf16.vlgmr.msra.gmra.mrb[60].mxu0 %vm294_vm3, %v3788_v4 }
0x170d   :  { %3049 = vmatprep.mubr.msk.bf16.mxu0 %vm3211_vm2, %v3210_v19 }
0x17df   :  { %v2246_v2 = vpop.f32.mrb[60].mxu0 }
0x17e0   :  { %v2247_v3 = vadd.f32 %v2246_v2, %v2207_v0  ;;  %v3039_v8 = vpop.f32.mrb[61].mxu0 }
0x17e1   :  { %v2249_v61 = vpop.f32.mrb[62].mxu0 }
0x17e2   :  { %v2257_v10 = vadd.f32 %v2256_v63, %v2247_v3  ;;  %v2250_v12 = vadd.f32 %v2249_v61, %v2209_v37  ;;  %v3040_v13 = vpop.f32.mrb[63].mxu0  ;;  %v2505_v37 = vand.u32 127, %v128_v1  ;;  %v2503_v61 = vadd.s32 8, %v3321_v5 }
0x17e4   :  { %v2258_v14 = vadd.f32 %v2256_v63, %v2250_v12  ;;  %v2259_v48 = vmax.f32 %v2257_v10, 0.0  ;;  %vm2506_vm9 = vcmp.eq.s32.totalorder %v3321_v5, %v2505_v37  ;;  %vm2507_vm10 = vcmp.eq.s32.totalorder %v2503_v61, %v2505_v37 }
0x17e6   :  { %v2260_v15 = vmax.f32 %v2258_v14, 0.0 }
0x17e8   :  { %v2261_v16 = vpack.c.bf16 %v2260_v15, %v2259_v48 }
0x17ea   :  { %3044 = vmatmul.mubr.msk.bf16.vlgmr.msra.gmra.mrb[60].mxu1 %vm2037_vm8, %v2261_v16 }
0x17eb   :  { %3055 = vmatprep.mubr.msk.bf16.mxu1 %vm3211_vm2, %v3210_v19  ;;  %3054 = vmatpush3.bf16.msra.mxu1 %v2382_v26 }
0x18bd   :  { %v2306_v17 = vpop.f32.mrb[60].mxu1 }
0x18be   :  { %v3045_v43 = vpop.f32.mrb[61].mxu1 }
0x18bf   :  { %v2309_v18 = vpop.f32.mrb[62].mxu1 }
0x18c0   :  { %v2313_v20 = vpack.c.bf16 %v2309_v18, %v2306_v17  ;;  %v3046_v21 = vpop.f32.mrb[63].mxu1 }
0x18c2   :  { %3048 = vmatpush3.bf16.msra.mxu0 %v2313_v20 }
0x18c3   :  { %3059 = vmatprep.subr.bf16.mxu0 %v3210_v19 }
0x18c5   :  { %3050 = vmatmul.mubr.msk.bf16.vlgmr.msra.gmra.mrb[64].mxu0 %vm294_vm3, %v3788_v4 }
0x18c6   :  { %3061 = vmatprep.mubr.msk.bf16.mxu0 %vm3211_vm2, %v3210_v19 }
0x1998   :  { %v2354_v31 = vpop.f32.mrb[64].mxu0 }
0x1999   :  { %v2355_v32 = vadd.f32 %v2354_v31, %v2315_v29  ;;  %v3051_v33 = vpop.f32.mrb[65].mxu0 }
0x199a   :  { %v2357_v36 = vpop.f32.mrb[66].mxu0  ;;  %v2544_v33 = vstv %s3910_s14 }
0x199b   :  { %v2365_v38 = vadd.f32 %v2364_v28, %v2355_v32  ;;  %v2358_v39 = vadd.f32 %v2357_v36, %v2317_v35  ;;  %v3052_v19 = vpop.f32.mrb[67].mxu0  ;;  %v2547_v36 = vstv %s3911_s15 }
0x199d   :  { %v2366_v40 = vadd.f32 %v2364_v28, %v2358_v39  ;;  %v2367_v44 = vmax.f32 %v2365_v38, 0.0 }
0x199f   :  { %v2368_v45 = vmax.f32 %v2366_v40, 0.0 }
0x19a1   :  { %v2369_v46 = vpack.c.bf16 %v2368_v45, %v2367_v44 }
0x19a3   :  { %3056 = vmatmul.mubr.msk.bf16.vlgmr.msra.gmra.mrb[64].mxu1 %vm2037_vm8, %v2369_v46 }
0x1a76   :  { %v2418_v42 = vpop.f32.mrb[64].mxu1 }
0x1a77   :  { %v3057_v47 = vpop.f32.mrb[65].mxu1 }
0x1a78   :  { %v2421_v49 = vpop.f32.mrb[66].mxu1 }
0x1a79   :  { %v2425_v6 = vpack.c.bf16 %v2421_v49, %v2418_v42  ;;  %v3058_v11 = vpop.f32.mrb[67].mxu1 }
0x1a7b   :  { %3060 = vmatpush3.bf16.msra.mxu0 %v2425_v6 }
0x1a7e   :  { %3062 = vmatmul.mubr.msk.bf16.vlgmr.msra.gmra.mrb[68].mxu0 %vm294_vm3, %v3788_v4 }
0x1b51   :  { %v2466_v50 = vpop.f32.mrb[68].mxu0 }
0x1b52   :  { %v2467_v51 = vadd.f32 %v2466_v50, %v2427_v30  ;;  %v3063_v52 = vpop.f32.mrb[69].mxu0 }
0x1b53   :  { %v2469_v54 = vpop.f32.mrb[70].mxu0 }
0x1b54   :  { %v2477_v7 = vadd.f32 %v2476_v27, %v2467_v51  ;;  %v2470_v55 = vadd.f32 %v2469_v54, %v2429_v53  ;;  %v3064_v56 = vpop.f32.mrb[71].mxu0 }
0x1b56   :  { %v2479_v57 = vmax.f32 %v2477_v7, 0.0  ;;  %v2478_v58 = vadd.f32 %v2476_v27, %v2470_v55 }
0x1b58   :  { %v2480_v59 = vmax.f32 %v2478_v58, 0.0  ;;  %2483 = vrot.lane.b32.xlu0 %v2479_v57, %s3220_s11 }
0x1b5a   :  { %2485 = vrot.lane.b32.xlu1 %v2480_v59, %s3220_s11 }
0x1b5c   :  { %2491 = vrot.lane.b32.xlu0 %v2479_v57, %s3221_s30 }
0x1b5e   :  { %2493 = vrot.lane.b32.xlu1 %v2480_v59, %s3221_s30 }
0x1bca   :  { %v2484_v4 = vpop.permute.xlu0 %2483 }
0x1bcb   :  { %v2489_v9 = vadd.f32 %v2484_v4, %v2479_v57 }
0x1bcc   :  { %v2486_v34 = vpop.permute.xlu1 %2485 }
0x1bcd   :  { %v2490_v62 = vadd.f32 %v2486_v34, %v2480_v59 }
0x1bce   :  { %v2492_v60 = vpop.permute.xlu0 %2491 }
0x1bcf   :  { %v2497_v63 = vadd.f32 %v2492_v60, %v2489_v9 }
0x1bd0   :  { %v2494_v0 = vpop.permute.xlu1 %2493 }
0x1bd1   :  { %v2499_v2 = vmul.f32 0.33333334, %v2497_v63  ;;  %v2498_v3 = vadd.f32 %v2494_v0, %v2490_v62 }
0x1bd3   :  { %v2500_v8 = vmul.f32 0.33333334, %v2498_v3  ;;  %2510 = vperm.xlu0 %3081, %v2499_v2  }
0x1bd5   :  { %2515 = vperm.xlu1 %3082, %v2500_v8  }
0x1c52   :  { %v2511_v10 = vpop.permute.xlu0 %2510 }
0x1c53   :  { %v2518_v12 = vsel %vm2506_vm9, %v2511_v10, 0.0 }
0x1c54   :  { %v2516_v13 = vpop.permute.xlu1 %2515  ;;  %v2520_v48 = vsel %vm294_vm3, %v2518_v12, 0.0 }
0x1c55   :  { %v2519_v14 = vsel %vm2507_vm10, %v2516_v13, 0.0 }
0x1c56   :  { %v2521_v15 = vsel %vm294_vm3, %v2519_v14, 0.0 }
0x1c57   :  { %v2522_v16 = vadd.f32 %v2521_v15, %v2520_v48 }
0x1c59   :  { %v2523_v17 = vrot.slane %v2522_v16, 4 }
0x1c5b   :  { %v2524_v43 = vadd.f32 %v2523_v17, %v2522_v16 }
0x1c5d   :  { %v2525_v18 = vrot.slane %v2524_v43, 2 }
0x1c5f   :  { %v2526_v20 = vadd.f32 %v2525_v18, %v2524_v43 }
0x1c61   :  { %v2527_v21 = vrot.slane %v2526_v20, 1 }
0x1c63   :  { %v2528_v1 = vadd.f32 %v2527_v21, %v2526_v20 }
0x1c65   :  { %v2529_v22 = vsel %vm294_vm3, %v2528_v1, 0.0 }
0x1c66   :  { %2530 = vadd.xlane.f32.xlu1 %v2529_v22 }
0x1cf3   :  { %v2531_v5 = vpop.xlane.xlu1 %2530 }
0x1cf4   :  { %v2532_v23 = vmul.f32 0.0625, %v2531_v5 }
0x1cf6   :  { %v2533_v24 = vsub.f32 %v2528_v1, %v2532_v23 }
0x1cf8   :  { %v2534_v25 = vmul.f32 %v2533_v24, %v2533_v24 }
0x1cfa   :  { %v2535_v41 = vsel %vm294_vm3, %v2534_v25, 0.0 }
0x1cfb   :  { %2536 = vadd.xlane.f32.xlu0 %v2535_v41 }
0x1d88   :  { %v2537_v26 = vpop.xlane.xlu0 %2536 }
0x1d89   :  { %v2538_v28 = vmul.f32 0.0625, %v2537_v26 }
0x1d8b   :  { %v2539_v29 = vadd.f32 1e-05, %v2538_v28 }
0x1d8d   :  { %3157 = vrsqrt.f32 %v2539_v29 }
0x1d97   :  { %v3158_v31 = vpop.eup %3157 }
0x1d98   :  { %v2541_v32 = vmul.f32 %v3158_v31, %v2533_v24 }
0x1d9a   :  { %v2542_v35 = vmax.f32 %v2541_v32, 0.0 }
0x1d9c   :  { %v2545_v38 = vmul.f32 %v2544_v33, %v2542_v35 }
0x1d9e   :  { %v2548_v39 = vadd.f32 %v2547_v36, %v2545_v38 }
0x1da0   :  { %v2551_v19 = vsel %vm294_vm3, %v2548_v39, -inf  ;;  %2550 = vst.msk [vmem:[#allocation4] sm:$0x1] %vm2549_vm11, %v2548_v39 }
0x1da1   :  { %2552 = vmax.xlane.f32.xlu0 %v2551_v19 }
0x1da2   :  { %3171 = shalt.err (!%p3168_p4)
}
0x1da3   :  { %s3172_s9 = scalar_lea.hbm %s3912_s16, 16 }
0x1da4   :  { %p3173_p5 = scmp.ne.s32.totalorder %s3912_s16, %s3172_s9  ;;  %p3176_p6 = scmp.lt.u32.totalorder %s3172_s9, %s3912_s16 }
0x1da6   :  { %p3178_p7 = pnand %p3176_p6, %p3173_p5 }
0x1da8   :  { %3181 = shalt.err (!%p3178_p7)
}
0x1da9   :  { %2565 = dma.vmem_to_hbm [thread:$0]  %s2563_s7, 16, %s3912_s16, [#allocation5]   ;;  %vm2554_vm12 = vcmask 0  }
0x1daa   :  { %s3223_s29 = smov [#allocation6]  }
0x1dab   :  { %s2572_s0 = sshll.u32 %s3223_s29, 4  ;;  %s2573_s0 = int_to_ptr.vmem [resolvable:$true] %s2572_s0 }
0x1dac   :  { %s3182_s6 = scalar_lea.vmem %s2573_s0, 16  ;;  %s3186_s18 = scalar_lea.vmem %s2573_s0, 32 }
0x1dad   :  { %p3183_p8 = scmp.ne.s32.totalorder %s2573_s0, %s3182_s6  ;;  %p3187_p9 = scmp.lt.s32.totalorder %s2573_s0, %s2573_s0 }
0x1dae   :  { %p3188_p10 = scmp.lt.s32.totalorder %s3186_s18, %s3182_s6 }
0x1db0   :  { %p3189_p11 = por %p3188_p10, %p3187_p9 }
0x1db2   :  { %p3190_p12 = pnand %p3189_p11, %p3183_p8 }
0x1e2e   :  { %v2553_v40 = vpop.xlane.xlu0 %2552 }
0x1e2f   :  { %2555 = vst.msk [vmem:[#allocation6] sm:$0x1] %vm2554_vm12, %v2553_v40 }
0x1e30   :  { %3193 = shalt.err (!%p3190_p12)
}
0x1e31   :  { %s3194_s26 = scalar_lea.hbm %s3913_s17, 16 }
0x1e32   :  { %p3195_p13 = scmp.ne.s32.totalorder %s3913_s17, %s3194_s26  ;;  %p3198_p0 = scmp.lt.u32.totalorder %s3194_s26, %s3913_s17 }
0x1e34   :  { %p3200_p1 = pnand %p3198_p0, %p3195_p13 }
0x1e36   :  { %3203 = shalt.err (!%p3200_p1)
}
0x1e37   :  { %2575 = dma.vmem_to_hbm [thread:$0]  %s2573_s0, 16, %s3913_s17, [#allocation7]  }
0x1e38   :  { %3204 = dma.done.wait [#allocation5], 16  }
0x1e39   :  { %3205 = vsyncadd [#allocation5], 4294967280 }
0x1e3a   :  { %3206 = dma.done.wait [#allocation7], 16  }
0x1e3b   :  { %3207 = vsyncadd [#allocation7], 4294967280 }
0x1e3c   :  { %2582 = vsyncpa [#allocation5], 1 }
0x1e3d   :  { %2583 = vsyncpa [#allocation7], 1 }

</bundles_post_ra>
